<compile_context>
chip_gen: v7x
topology: tpu7x:2x2x1
jax: 0.10.0
libtpu: 0.0.40
codegen_flags: <defaults>
</compile_context>

<pallas_src>
import jax
import jax.numpy as jnp
import numpy as np
from jax.experimental import pallas as pl
from jax.experimental.pallas import tpu as pltpu


def _sum_all(v):
    # Sublane/TS axis first (cross-vreg VPU adds), then one XLU lane reduce.
    return jnp.sum(jnp.sum(v, axis=-2, keepdims=True), axis=-1, keepdims=True)


def _max_all(v):
    return jnp.max(jnp.max(v, axis=-2, keepdims=True), axis=-1, keepdims=True)


def _vmem_capacity_bytes():
    try:
        cap = int(pltpu.get_tpu_info().vmem_capacity_bytes)
        if cap > 0:
            return cap
    except Exception:
        pass
    return 64 * 1024 * 1024          # v7x worst case (smallest VMEM)


def _make_kernel(ch, n_out, nt, pad, inv_count):
    """Fused two-pass kernel.  Grid = (batch, pass, token_tile)."""

    def kernel(x_ref, t_ref, wi_ref, bi_ref, wk_ref, bk_ref, wv_ref, bv_ref,
               wo_ref, bo_ref, wr_ref, o_ref,
               m_scr, l_scr, wx_scr, p_scr, acc_scr):
        pass_id = pl.program_id(1)
        t_id = pl.program_id(2)
        last_tile = t_id == nt - 1

        # ---- per-batch init (start of pass 0) -------------------------------
        @pl.when(jnp.logical_and(pass_id == 0, t_id == 0))
        def _init():
            m_scr[...] = jnp.full((1, 1), -1e30, jnp.float32)
            l_scr[...] = jnp.zeros((1, 1), jnp.float32)
            wx_scr[...] = jnp.zeros((ch, 1, 1), jnp.float32)
            acc_scr[...] = jnp.zeros((1, 1), jnp.float32)

        # ---- pass 0: online softmax + softmax-weighted input ----------------
        @pl.when(pass_id == 0)
        def _pass0():
            # logits = x . wi + bi   (wi/bi are SMEM scalars -> scalar-vector ops)
            logits = wi_ref[0, 0] * x_ref[0, 0]
            for c in range(1, ch):
                logits = logits + wi_ref[c, 0] * x_ref[0, c]
            logits = logits + bi_ref[0, 0]

            m_old = m_scr[...]                               # (1, 1)
            m_new = jnp.maximum(m_old, _max_all(logits))
            alpha = jnp.exp(m_old - m_new)
            e = jnp.exp(logits - m_new)                      # (TS, 128)

            l_scr[...] = alpha * l_scr[...] + _sum_all(e)
            for c in range(ch):
                wx_scr[c] = alpha * wx_scr[c] + _sum_all(e * x_ref[0, c])
            m_scr[...] = m_new

        # ---- end of pass 0: tiny attention tail, once per batch -------------
        @pl.when(jnp.logical_and(pass_id == 0, last_tile))
        def _tail():
            m_final = m_scr[...]
            l = l_scr[...]
            if pad > 0:
                # Padded tokens (x == 0) have logit == bi; remove their
                # contribution to the partition function in closed form.
                l = l - pad * jnp.exp(bi_ref[0, 0] - m_final)
            inv_l = 1.0 / l                                  # once per batch

            cv = bk_ref[...]                                 # (1, d) context vector
            for c in range(ch):
                cv = cv + (wx_scr[c] * inv_l) * wk_ref[c:c + 1, :]

            # fc_v(T): vt[j] = sum_i T[i] * fc_v_w[j, i] + fc_v_b[j]
            tcol = t_ref[0]                                  # (d, 1)
            vt = jnp.sum(wv_ref[...] * tcol, axis=0, keepdims=True) + bv_ref[...]
            v = vt * cv                                      # (1, d)

            # p[c] = v @ (fc_o_w.T @ out_proj)[:, c] + (fc_o_b @ out_proj)[c]
            for c in range(n_out):
                p_c = jnp.sum(v * wo_ref[c:c + 1, :], axis=1, keepdims=True)
                p_scr[c] = p_c + bo_ref[0, c]

        # ---- pass 1: residual + broadcast attn output, SiLU, mean -----------
        @pl.when(pass_id == 1)
        def _pass1():
            acc_tile = None
            for co in range(n_out):
                pre = wr_ref[co, 0] * x_ref[0, 0]
                for ci in range(1, ch):
                    pre = pre + wr_ref[co, ci] * x_ref[0, ci]
                pre = pre + p_scr[co]                        # broadcast attn output
                act = pre * jax.nn.sigmoid(pre)              # SiLU
                acc_tile = act if acc_tile is None else acc_tile + act
            acc_scr[...] = acc_scr[...] + _sum_all(acc_tile)   # 1 reduction / tile

        # ---- finalize: global average over the true N * n_out elements ------
        @pl.when(jnp.logical_and(pass_id == 1, last_tile))
        def _finalize():
            acc = acc_scr[...]
            if pad > 0:
                # Padded tokens contribute exactly silu(p[co]) each.
                corr = jnp.zeros((1, 1), jnp.float32)
                for c in range(n_out):
                    p_c = p_scr[c]
                    corr = corr + p_c * jax.nn.sigmoid(p_c)
                acc = acc - pad * corr
            o_ref[0] = acc * inv_count

    return kernel


def denim_forward(I, T, params, *, max_sublanes_per_tile=None):
    """Forward pass of DeNIM_StyleSwap_to_Canon as one fused Pallas TPU kernel."""
    I = jnp.asarray(I, jnp.float32)
    T = jnp.asarray(T, jnp.float32)
    bs, ch, H, W = I.shape
    N = H * W
    d = params["inp_proj"].shape[1]
    n_out = params["res_proj"].shape[1]                # 3

    # ---- per-generation token tiling -----------------------------------
    vmem_cap = _vmem_capacity_bytes()
    # Budget for the double-buffered x stream + compiler temporaries.
    x_budget = min(int(vmem_cap * 0.6), 44 * 1024 * 1024)
    bytes_per_row = 128 * 4
    # 2x (double buffer) of ch rows + ~8 (TS,128) f32 temporaries of headroom.
    max_ts = x_budget // ((2 * ch + 8) * bytes_per_row)
    max_ts = max(8, min(4096, (max_ts // 8) * 8))
    if max_sublanes_per_tile is not None:              # test hook for nt > 1
        max_ts = max(8, (max_sublanes_per_tile // 8) * 8)

    n128 = -(-N // 128)
    if n128 <= max_ts:
        nt, ts = 1, n128          # single resident tile: pass 1 reuses the VMEM slab
    else:
        nt = -(-n128 // max_ts)
        ts = ((-(-n128 // nt)) + 7) // 8 * 8           # multiple of 8 sublanes
    tn = ts * 128
    n_pad = nt * tn
    pad = n_pad - N                                    # padded tokens (x == 0)

    # ---- layout glue: stay channel-major (no transpose, no channel padding) -
    x = I.reshape(bs, ch, N)
    if pad > 0:
        x = jnp.pad(x, ((0, 0), (0, 0), (0, pad)))
    x = x.reshape(bs, ch, nt * ts, 128)
    t3 = T.reshape(bs, d, 1)

    # ---- weight folding (prep only; exact up to fp reassociation) -----------
    f32 = jnp.float32
    inp = jnp.asarray(params["inp_proj"], f32)          # (ch, d)
    wi = inp @ jnp.asarray(params["fc_i_w"], f32).T     # (ch, 1)
    bi = jnp.asarray(params["fc_i_b"], f32).reshape(1, 1)
    wk = inp @ jnp.asarray(params["fc_k_w"], f32).T     # (ch, d)
    bk = jnp.asarray(params["fc_k_b"], f32).reshape(1, d)
    wv = jnp.asarray(params["fc_v_w"], f32).T           # (d, d)
    bv = jnp.asarray(params["fc_v_b"], f32).reshape(1, d)
    out_p = jnp.asarray(params["out_proj"], f32)        # (d, n_out)
    wo = out_p.T @ jnp.asarray(params["fc_o_w"], f32)   # (n_out, d)
    bo = jnp.asarray(params["fc_o_b"], f32).reshape(1, d) @ out_p    # (1, n_out)
    wr = jnp.asarray(params["res_proj"], f32).T         # (n_out, ch)

    kern = _make_kernel(ch, n_out, nt, pad, 1.0 / (N * n_out))

    x_reads = 1 if nt == 1 else 2                       # resident block skips pass-1 DMA
    cost = pl.CostEstimate(
        flops=int(2 * bs * N * (2 * ch + n_out * (ch + 2))),
        transcendentals=int(bs * N * (1 + n_out)),
        bytes_accessed=int(x_reads * bs * ch * n_pad * 4 + bs * (d + 1) * 4),
    )

    vmem_limit = max(32 * 1024 * 1024, vmem_cap - 8 * 1024 * 1024)

    smem = pltpu.MemorySpace.SMEM
    out = pl.pallas_call(
        kern,
        out_shape=jax.ShapeDtypeStruct((bs, 1, 1), jnp.float32),
        grid=(bs, 2, nt),
        in_specs=[
            pl.BlockSpec((1, ch, ts, 128), lambda b, p, t: (b, 0, t, 0)),   # x tiles
            pl.BlockSpec((1, d, 1), lambda b, p, t: (b, 0, 0)),             # T (column)
            pl.BlockSpec(memory_space=smem),                                # wi fold (ch,1)
            pl.BlockSpec(memory_space=smem),                                # bi (1,1)
            pl.BlockSpec((ch, d), lambda b, p, t: (0, 0)),                  # wk fold
            pl.BlockSpec((1, d), lambda b, p, t: (0, 0)),                   # bk
            pl.BlockSpec((d, d), lambda b, p, t: (0, 0)),                   # fc_v_w.T
            pl.BlockSpec((1, d), lambda b, p, t: (0, 0)),                   # bv
            pl.BlockSpec((n_out, d), lambda b, p, t: (0, 0)),               # wo fold
            pl.BlockSpec(memory_space=smem),                                # bo fold (1,n_out)
            pl.BlockSpec(memory_space=smem),                                # res_proj.T (n_out,ch)
        ],
        out_specs=pl.BlockSpec((1, 1, 1), lambda b, p, t: (b, 0, 0)),
        scratch_shapes=[
            pltpu.VMEM((1, 1), jnp.float32),             # running softmax max
            pltpu.VMEM((1, 1), jnp.float32),             # running exp-sum
            pltpu.VMEM((ch, 1, 1), jnp.float32),         # running softmax-weighted x
            pltpu.VMEM((n_out, 1, 1), jnp.float32),      # broadcast attention output
            pltpu.VMEM((1, 1), jnp.float32),             # running SiLU sum
        ],
        compiler_params=pltpu.CompilerParams(
            dimension_semantics=("parallel", "arbitrary", "arbitrary"),
            vmem_limit_bytes=int(vmem_limit)),
        cost_estimate=cost,
    )(x, t3, wi, bi, wk, bk, wv, bv, wo, bo, wr)
    return out.reshape(bs, 1)


def ref_forward(I, T, params):
    """Pure-JAX reference reproducing the PyTorch forward exactly."""
    bs, ch, H, W = I.shape
    N = H * W
    x = jnp.transpose(I.reshape(bs, ch, N), (0, 2, 1))                 # (bs, N, ch)
    feat = x @ params["inp_proj"]                                      # (bs, N, d)
    resid = x @ params["res_proj"]                                     # (bs, N, 3)
    T_rep = jnp.repeat(T[:, None, :], N, axis=1)                       # (bs, N, d)

    i = feat @ params["fc_i_w"].T + params["fc_i_b"]                   # (bs, N, 1)
    w = jax.nn.softmax(i, axis=1)
    K = feat @ params["fc_k_w"].T + params["fc_k_b"]
    cv = jnp.sum(w * K, axis=1, keepdims=True)                         # (bs, 1, d)
    v = (T_rep @ params["fc_v_w"].T + params["fc_v_b"]) * cv
    attn_out = v @ params["fc_o_w"].T + params["fc_o_b"]

    out = attn_out @ params["out_proj"] + resid
    out = jax.nn.silu(out)
    out = jnp.mean(out, axis=(1, 2))[:, None]                          # (bs, 1)
    return out


def init_params(key, k, ch):
    d = k * k
    ks = jax.random.split(key, 11)

    def kaiming(key, shape):          # torch kaiming_normal_: fan_in, gain=sqrt(2)
        fan_in = shape[1]
        return jax.random.normal(key, shape, jnp.float32) * np.sqrt(2.0 / fan_in)

    # NOTE: the module inits Linear biases to 0; small random biases are used
    # here only to make the correctness check exercise every bias code path.
    return {
        "inp_proj": kaiming(ks[0], (ch, d)),
        "res_proj": kaiming(ks[1], (ch, 3)),
        "out_proj": kaiming(ks[2], (d, 3)),
        "fc_i_w": jax.random.normal(ks[3], (1, d), jnp.float32) * 0.001,
        "fc_i_b": jax.random.normal(ks[4], (1,), jnp.float32) * 0.01,
        "fc_k_w": jax.random.normal(ks[5], (d, d), jnp.float32) * 0.001,
        "fc_k_b": jax.random.normal(ks[6], (d,), jnp.float32) * 0.01,
        "fc_v_w": jax.random.normal(ks[7], (d, d), jnp.float32) * 0.001,
        "fc_v_b": jax.random.normal(ks[8], (d,), jnp.float32) * 0.01,
        "fc_o_w": jax.random.normal(ks[9], (d, d), jnp.float32) * 0.001,
        "fc_o_b": jax.random.normal(ks[10], (d,), jnp.float32) * 0.01,
    }


if __name__ == "__main__":
    k = 4            # -> d_model = k*k = 16
    ch = 3
    key = jax.random.PRNGKey(0)
    kp, k1, k2, k3, k4, k5, k6 = jax.random.split(key, 7)
    params = init_params(kp, k, ch)

    fwd = jax.jit(denim_forward, static_argnames=("max_sublanes_per_tile",))

    # 1) aligned shape: bs=2, ch=3, 16x16 image (N=256 tokens, single resident tile)
    bs, H, W = 2, 16, 16
    I = jax.random.normal(k1, (bs, ch, H, W), jnp.float32)
    T = jax.random.normal(k2, (bs, k * k), jnp.float32)
    out = jax.block_until_ready(fwd(I, T, params))
    np.testing.assert_allclose(np.asarray(out), np.asarray(ref_forward(I, T, params)),
                               rtol=1e-4, atol=1e-5)

    # 2) ragged token count (16x18 -> 288 tokens): closed-form padding correction
    I2 = jax.random.normal(k3, (bs, ch, 16, 18), jnp.float32)
    T2 = jax.random.normal(k4, (bs, k * k), jnp.float32)
    out2 = jax.block_until_ready(fwd(I2, T2, params))
    np.testing.assert_allclose(np.asarray(out2), np.asarray(ref_forward(I2, T2, params)),
                               rtol=1e-4, atol=1e-5)

    # 3) multi-tile two-pass path (tiny forced tiles) + ragged tail (40x40 -> 1600 tokens)
    I3 = jax.random.normal(k5, (bs, ch, 40, 40), jnp.float32)
    T3 = jax.random.normal(k6, (bs, k * k), jnp.float32)
    out3 = jax.block_until_ready(fwd(I3, T3, params, max_sublanes_per_tile=8))
    np.testing.assert_allclose(np.asarray(out3), np.asarray(ref_forward(I3, T3, params)),
                               rtol=1e-4, atol=1e-5)

    print("KERNEL_OK")
</pallas_src>

<mosaic_0001>
module attributes {stable_mosaic.version = 11 : i64} {
  func.func @kernel(%arg0: i32, %arg1: i32, %arg2: i32, %arg3: memref<1x3x2x128xf32, #tpu.memory_space<vmem>>, %arg4: memref<1x16x1xf32, #tpu.memory_space<vmem>>, %arg5: memref<3x1xf32, #tpu.memory_space<smem>>, %arg6: memref<1x1xf32, #tpu.memory_space<smem>>, %arg7: memref<3x16xf32, #tpu.memory_space<vmem>>, %arg8: memref<1x16xf32, #tpu.memory_space<vmem>>, %arg9: memref<16x16xf32, #tpu.memory_space<vmem>>, %arg10: memref<1x16xf32, #tpu.memory_space<vmem>>, %arg11: memref<3x16xf32, #tpu.memory_space<vmem>>, %arg12: memref<1x3xf32, #tpu.memory_space<smem>>, %arg13: memref<3x3xf32, #tpu.memory_space<smem>>, %arg14: memref<1x1x1xf32, #tpu.memory_space<vmem>>, %arg15: memref<1x1xf32, #tpu.memory_space<vmem>>, %arg16: memref<1x1xf32, #tpu.memory_space<vmem>>, %arg17: memref<3x1x1xf32, #tpu.memory_space<vmem>>, %arg18: memref<3x1x1xf32, #tpu.memory_space<vmem>>, %arg19: memref<1x1xf32, #tpu.memory_space<vmem>>) attributes {dimension_semantics = [#tpu.dimension_semantics<parallel>, #tpu.dimension_semantics<arbitrary>, #tpu.dimension_semantics<arbitrary>], iteration_bounds = array<i64: 2, 2, 1>, scalar_prefetch = 0 : i64, scratch_operands = 5 : i64, tpu.core_type = #tpu.core_type<tc>, window_params = [{transform_indices = @transform_0, window_bounds = array<i64: 1, 3, 2, 128>}, {transform_indices = @transform_1, window_bounds = array<i64: 1, 16, 1>}, {transform_indices = @transform_2, window_bounds = array<i64: 3, 1>}, {transform_indices = @transform_3, window_bounds = array<i64: 1, 1>}, {pipeline_mode = #tpu.pipeline_mode<synchronous>, transform_indices = @transform_4, window_bounds = array<i64: 3, 16>}, {pipeline_mode = #tpu.pipeline_mode<synchronous>, transform_indices = @transform_5, window_bounds = array<i64: 1, 16>}, {pipeline_mode = #tpu.pipeline_mode<synchronous>, transform_indices = @transform_6, window_bounds = array<i64: 16, 16>}, {pipeline_mode = #tpu.pipeline_mode<synchronous>, transform_indices = @transform_7, window_bounds = array<i64: 1, 16>}, {pipeline_mode = #tpu.pipeline_mode<synchronous>, transform_indices = @transform_8, window_bounds = array<i64: 3, 16>}, {transform_indices = @transform_9, window_bounds = array<i64: 1, 3>}, {transform_indices = @transform_10, window_bounds = array<i64: 3, 3>}, {transform_indices = @transform_11, window_bounds = array<i64: 1, 1, 1>}]} {
    %c0_i32 = arith.constant 0 : i32
    %0 = arith.cmpi eq, %arg2, %c0_i32 : i32
    %c0_i32_0 = arith.constant 0 : i32
    %1 = arith.cmpi eq, %arg1, %c0_i32_0 : i32
    %c0_i32_1 = arith.constant 0 : i32
    %2 = arith.cmpi eq, %arg2, %c0_i32_1 : i32
    %3 = arith.andi %1, %2 : i1
    %4 = arith.extui %3 : i1 to i32
    %c0_i32_2 = arith.constant 0 : i32
    %5 = arith.cmpi ne, %4, %c0_i32_2 : i32
    scf.if %5 {
      %cst = arith.constant -1.000000e+30 : f32
      %20 = vector.broadcast %cst : f32 to vector<1x1xf32>
      %c0 = arith.constant 0 : index
      %c0_10 = arith.constant 0 : index
      %21 = vector.load %arg15[%c0, %c0_10] : memref<1x1xf32, #tpu.memory_space<vmem>>, vector<1x1xf32>
      tpu.vector_store %arg15[%c0, %c0_10], %20 {strides = array<i32>} : memref<1x1xf32, #tpu.memory_space<vmem>>, vector<1x1xf32>,
      %cst_11 = arith.constant 0.000000e+00 : f32
      %22 = vector.broadcast %cst_11 : f32 to vector<1x1xf32>
      %c0_12 = arith.constant 0 : index
      %c0_13 = arith.constant 0 : index
      %23 = vector.load %arg16[%c0_12, %c0_13] : memref<1x1xf32, #tpu.memory_space<vmem>>, vector<1x1xf32>
      tpu.vector_store %arg16[%c0_12, %c0_13], %22 {strides = array<i32>} : memref<1x1xf32, #tpu.memory_space<vmem>>, vector<1x1xf32>,
      %cst_14 = arith.constant 0.000000e+00 : f32
      %24 = vector.broadcast %cst_14 : f32 to vector<3x1x1xf32>
      %c0_15 = arith.constant 0 : index
      %c0_16 = arith.constant 0 : index
      %c0_17 = arith.constant 0 : index
      %25 = vector.load %arg17[%c0_15, %c0_16, %c0_17] : memref<3x1x1xf32, #tpu.memory_space<vmem>>, vector<3x1x1xf32>
      tpu.vector_store %arg17[%c0_15, %c0_16, %c0_17], %24 {strides = array<i32>} : memref<3x1x1xf32, #tpu.memory_space<vmem>>, vector<3x1x1xf32>,
      %cst_18 = arith.constant 0.000000e+00 : f32
      %26 = vector.broadcast %cst_18 : f32 to vector<1x1xf32>
      %c0_19 = arith.constant 0 : index
      %c0_20 = arith.constant 0 : index
      %27 = vector.load %arg19[%c0_19, %c0_20] : memref<1x1xf32, #tpu.memory_space<vmem>>, vector<1x1xf32>
      tpu.vector_store %arg19[%c0_19, %c0_20], %26 {strides = array<i32>} : memref<1x1xf32, #tpu.memory_space<vmem>>, vector<1x1xf32>,
    } else {
    }
    %c0_i32_3 = arith.constant 0 : i32
    %6 = arith.cmpi eq, %arg1, %c0_i32_3 : i32
    %7 = arith.extui %6 : i1 to i32
    %c0_i32_4 = arith.constant 0 : i32
    %8 = arith.cmpi ne, %7, %c0_i32_4 : i32
    scf.if %8 {
      %c0 = arith.constant 0 : index
      %c0_10 = arith.constant 0 : index
      %20 = memref.load %arg5[%c0, %c0_10] : memref<3x1xf32, #tpu.memory_space<smem>>
      %c0_11 = arith.constant 0 : index
      %c0_12 = arith.constant 0 : index
      %c0_13 = arith.constant 0 : index
      %c0_14 = arith.constant 0 : index
      %21 = vector.load %arg3[%c0_11, %c0_12, %c0_13, %c0_14] : memref<1x3x2x128xf32, #tpu.memory_space<vmem>>, vector<1x1x2x128xf32>
      %22 = vector.shape_cast %21 : vector<1x1x2x128xf32> to vector<2x128xf32>
      %23 = vector.broadcast %20 : f32 to vector<2x128xf32>
      %24 = arith.mulf %23, %22 : vector<2x128xf32>
      %c1 = arith.constant 1 : index
      %c0_15 = arith.constant 0 : index
      %25 = memref.load %arg5[%c1, %c0_15] : memref<3x1xf32, #tpu.memory_space<smem>>
      %c0_16 = arith.constant 0 : index
      %c1_17 = arith.constant 1 : index
      %c0_18 = arith.constant 0 : index
      %c0_19 = arith.constant 0 : index
      %26 = vector.load %arg3[%c0_16, %c1_17, %c0_18, %c0_19] : memref<1x3x2x128xf32, #tpu.memory_space<vmem>>, vector<1x1x2x128xf32>
      %27 = vector.shape_cast %26 : vector<1x1x2x128xf32> to vector<2x128xf32>
      %28 = vector.broadcast %25 : f32 to vector<2x128xf32>
      %29 = arith.mulf %28, %27 : vector<2x128xf32>
      %30 = arith.addf %24, %29 : vector<2x128xf32>
      %c2 = arith.constant 2 : index
      %c0_20 = arith.constant 0 : index
      %31 = memref.load %arg5[%c2, %c0_20] : memref<3x1xf32, #tpu.memory_space<smem>>
      %c0_21 = arith.constant 0 : index
      %c2_22 = arith.constant 2 : index
      %c0_23 = arith.constant 0 : index
      %c0_24 = arith.constant 0 : index
      %32 = vector.load %arg3[%c0_21, %c2_22, %c0_23, %c0_24] : memref<1x3x2x128xf32, #tpu.memory_space<vmem>>, vector<1x1x2x128xf32>
      %33 = vector.shape_cast %32 : vector<1x1x2x128xf32> to vector<2x128xf32>
      %34 = vector.broadcast %31 : f32 to vector<2x128xf32>
      %35 = arith.mulf %34, %33 : vector<2x128xf32>
      %36 = arith.addf %30, %35 : vector<2x128xf32>
      %c0_25 = arith.constant 0 : index
      %c0_26 = arith.constant 0 : index
      %37 = memref.load %arg6[%c0_25, %c0_26] : memref<1x1xf32, #tpu.memory_space<smem>>
      %38 = vector.broadcast %37 : f32 to vector<2x128xf32>
      %39 = arith.addf %36, %38 : vector<2x128xf32>
      %c0_27 = arith.constant 0 : index
      %c0_28 = arith.constant 0 : index
      %40 = vector.load %arg15[%c0_27, %c0_28] : memref<1x1xf32, #tpu.memory_space<vmem>>, vector<1x1xf32>
      %cst = arith.constant dense<0xFF800000> : vector<128xf32>
      %41 = vector.multi_reduction <maximumf>, %39, %cst [0] : vector<2x128xf32> to vector<128xf32>
      %42 = vector.shape_cast %41 : vector<128xf32> to vector<1x128xf32>
      %cst_29 = arith.constant dense<0xFF800000> : vector<1xf32>
      %43 = vector.multi_reduction <maximumf>, %42, %cst_29 [1] : vector<1x128xf32> to vector<1xf32>
      %44 = vector.shape_cast %43 : vector<1xf32> to vector<1x1xf32>
      %45 = arith.maximumf %40, %44 : vector<1x1xf32>
      %46 = arith.subf %40, %45 : vector<1x1xf32>
      %47 = math.exp %46 : vector<1x1xf32>
      %48 = vector.broadcast %45 : vector<1x1xf32> to vector<2x128xf32>
      %49 = arith.subf %39, %48 : vector<2x128xf32>
      %50 = math.exp %49 : vector<2x128xf32>
      %c0_30 = arith.constant 0 : index
      %c0_31 = arith.constant 0 : index
      %51 = vector.load %arg16[%c0_30, %c0_31] : memref<1x1xf32, #tpu.memory_space<vmem>>, vector<1x1xf32>
      %52 = arith.mulf %47, %51 : vector<1x1xf32>
      %cst_32 = arith.constant dense<0.000000e+00> : vector<128xf32>
      %53 = vector.multi_reduction <add>, %50, %cst_32 [0] : vector<2x128xf32> to vector<128xf32>
      %54 = vector.shape_cast %53 : vector<128xf32> to vector<1x128xf32>
      %cst_33 = arith.constant dense<0.000000e+00> : vector<1xf32>
      %55 = vector.multi_reduction <add>, %54, %cst_33 [1] : vector<1x128xf32> to vector<1xf32>
      %56 = vector.shape_cast %55 : vector<1xf32> to vector<1x1xf32>
      %57 = arith.addf %52, %56 : vector<1x1xf32>
      %c0_34 = arith.constant 0 : index
      %c0_35 = arith.constant 0 : index
      %58 = vector.load %arg16[%c0_34, %c0_35] : memref<1x1xf32, #tpu.memory_space<vmem>>, vector<1x1xf32>
      tpu.vector_store %arg16[%c0_34, %c0_35], %57 {strides = array<i32>} : memref<1x1xf32, #tpu.memory_space<vmem>>, vector<1x1xf32>,
      %c0_36 = arith.constant 0 : index
      %c0_37 = arith.constant 0 : index
      %c0_38 = arith.constant 0 : index
      %59 = vector.load %arg17[%c0_36, %c0_37, %c0_38] : memref<3x1x1xf32, #tpu.memory_space<vmem>>, vector<1x1x1xf32>
      %60 = vector.shape_cast %59 : vector<1x1x1xf32> to vector<1x1xf32>
      %61 = arith.mulf %47, %60 : vector<1x1xf32>
      %c0_39 = arith.constant 0 : index
      %c0_40 = arith.constant 0 : index
      %c0_41 = arith.constant 0 : index
      %c0_42 = arith.constant 0 : index
      %62 = vector.load %arg3[%c0_39, %c0_40, %c0_41, %c0_42] : memref<1x3x2x128xf32, #tpu.memory_space<vmem>>, vector<1x1x2x128xf32>
      %63 = vector.shape_cast %62 : vector<1x1x2x128xf32> to vector<2x128xf32>
      %64 = arith.mulf %50, %63 : vector<2x128xf32>
      %cst_43 = arith.constant dense<0.000000e+00> : vector<128xf32>
      %65 = vector.multi_reduction <add>, %64, %cst_43 [0] : vector<2x128xf32> to vector<128xf32>
      %66 = vector.shape_cast %65 : vector<128xf32> to vector<1x128xf32>
      %cst_44 = arith.constant dense<0.000000e+00> : vector<1xf32>
      %67 = vector.multi_reduction <add>, %66, %cst_44 [1] : vector<1x128xf32> to vector<1xf32>
      %68 = vector.shape_cast %67 : vector<1xf32> to vector<1x1xf32>
      %69 = arith.addf %61, %68 : vector<1x1xf32>
      %c0_45 = arith.constant 0 : index
      %c0_46 = arith.constant 0 : index
      %c0_47 = arith.constant 0 : index
      %70 = vector.load %arg17[%c0_45, %c0_46, %c0_47] : memref<3x1x1xf32, #tpu.memory_space<vmem>>, vector<1x1x1xf32>
      %71 = vector.shape_cast %70 : vector<1x1x1xf32> to vector<1x1xf32>
      %72 = vector.shape_cast %69 : vector<1x1xf32> to vector<1x1x1xf32>
      tpu.vector_store %arg17[%c0_45, %c0_46, %c0_47], %72 {strides = array<i32>} : memref<3x1x1xf32, #tpu.memory_space<vmem>>, vector<1x1x1xf32>,
      %c1_48 = arith.constant 1 : index
      %c0_49 = arith.constant 0 : index
      %c0_50 = arith.constant 0 : index
      %73 = vector.load %arg17[%c1_48, %c0_49, %c0_50] : memref<3x1x1xf32, #tpu.memory_space<vmem>>, vector<1x1x1xf32>
      %74 = vector.shape_cast %73 : vector<1x1x1xf32> to vector<1x1xf32>
      %75 = arith.mulf %47, %74 : vector<1x1xf32>
      %c0_51 = arith.constant 0 : index
      %c1_52 = arith.constant 1 : index
      %c0_53 = arith.constant 0 : index
      %c0_54 = arith.constant 0 : index
      %76 = vector.load %arg3[%c0_51, %c1_52, %c0_53, %c0_54] : memref<1x3x2x128xf32, #tpu.memory_space<vmem>>, vector<1x1x2x128xf32>
      %77 = vector.shape_cast %76 : vector<1x1x2x128xf32> to vector<2x128xf32>
      %78 = arith.mulf %50, %77 : vector<2x128xf32>
      %cst_55 = arith.constant dense<0.000000e+00> : vector<128xf32>
      %79 = vector.multi_reduction <add>, %78, %cst_55 [0] : vector<2x128xf32> to vector<128xf32>
      %80 = vector.shape_cast %79 : vector<128xf32> to vector<1x128xf32>
      %cst_56 = arith.constant dense<0.000000e+00> : vector<1xf32>
      %81 = vector.multi_reduction <add>, %80, %cst_56 [1] : vector<1x128xf32> to vector<1xf32>
      %82 = vector.shape_cast %81 : vector<1xf32> to vector<1x1xf32>
      %83 = arith.addf %75, %82 : vector<1x1xf32>
      %c1_57 = arith.constant 1 : index
      %c0_58 = arith.constant 0 : index
      %c0_59 = arith.constant 0 : index
      %84 = vector.load %arg17[%c1_57, %c0_58, %c0_59] : memref<3x1x1xf32, #tpu.memory_space<vmem>>, vector<1x1x1xf32>
      %85 = vector.shape_cast %84 : vector<1x1x1xf32> to vector<1x1xf32>
      %86 = vector.shape_cast %83 : vector<1x1xf32> to vector<1x1x1xf32>
      tpu.vector_store %arg17[%c1_57, %c0_58, %c0_59], %86 {strides = array<i32>} : memref<3x1x1xf32, #tpu.memory_space<vmem>>, vector<1x1x1xf32>,
      %c2_60 = arith.constant 2 : index
      %c0_61 = arith.constant 0 : index
      %c0_62 = arith.constant 0 : index
      %87 = vector.load %arg17[%c2_60, %c0_61, %c0_62] : memref<3x1x1xf32, #tpu.memory_space<vmem>>, vector<1x1x1xf32>
      %88 = vector.shape_cast %87 : vector<1x1x1xf32> to vector<1x1xf32>
      %89 = arith.mulf %47, %88 : vector<1x1xf32>
      %c0_63 = arith.constant 0 : index
      %c2_64 = arith.constant 2 : index
      %c0_65 = arith.constant 0 : index
      %c0_66 = arith.constant 0 : index
      %90 = vector.load %arg3[%c0_63, %c2_64, %c0_65, %c0_66] : memref<1x3x2x128xf32, #tpu.memory_space<vmem>>, vector<1x1x2x128xf32>
      %91 = vector.shape_cast %90 : vector<1x1x2x128xf32> to vector<2x128xf32>
      %92 = arith.mulf %50, %91 : vector<2x128xf32>
      %cst_67 = arith.constant dense<0.000000e+00> : vector<128xf32>
      %93 = vector.multi_reduction <add>, %92, %cst_67 [0] : vector<2x128xf32> to vector<128xf32>
      %94 = vector.shape_cast %93 : vector<128xf32> to vector<1x128xf32>
      %cst_68 = arith.constant dense<0.000000e+00> : vector<1xf32>
      %95 = vector.multi_reduction <add>, %94, %cst_68 [1] : vector<1x128xf32> to vector<1xf32>
      %96 = vector.shape_cast %95 : vector<1xf32> to vector<1x1xf32>
      %97 = arith.addf %89, %96 : vector<1x1xf32>
      %c2_69 = arith.constant 2 : index
      %c0_70 = arith.constant 0 : index
      %c0_71 = arith.constant 0 : index
      %98 = vector.load %arg17[%c2_69, %c0_70, %c0_71] : memref<3x1x1xf32, #tpu.memory_space<vmem>>, vector<1x1x1xf32>
      %99 = vector.shape_cast %98 : vector<1x1x1xf32> to vector<1x1xf32>
      %100 = vector.shape_cast %97 : vector<1x1xf32> to vector<1x1x1xf32>
      tpu.vector_store %arg17[%c2_69, %c0_70, %c0_71], %100 {strides = array<i32>} : memref<3x1x1xf32, #tpu.memory_space<vmem>>, vector<1x1x1xf32>,
      %c0_72 = arith.constant 0 : index
      %c0_73 = arith.constant 0 : index
      %101 = vector.load %arg15[%c0_72, %c0_73] : memref<1x1xf32, #tpu.memory_space<vmem>>, vector<1x1xf32>
      tpu.vector_store %arg15[%c0_72, %c0_73], %45 {strides = array<i32>} : memref<1x1xf32, #tpu.memory_space<vmem>>, vector<1x1xf32>,
    } else {
    }
    %c0_i32_5 = arith.constant 0 : i32
    %9 = arith.cmpi eq, %arg1, %c0_i32_5 : i32
    %10 = arith.andi %9, %0 : i1
    %11 = arith.extui %10 : i1 to i32
    %c0_i32_6 = arith.constant 0 : i32
    %12 = arith.cmpi ne, %11, %c0_i32_6 : i32
    scf.if %12 {
      %c0 = arith.constant 0 : index
      %c0_10 = arith.constant 0 : index
      %20 = vector.load %arg16[%c0, %c0_10] : memref<1x1xf32, #tpu.memory_space<vmem>>, vector<1x1xf32>
      %cst = arith.constant 1.000000e+00 : f32
      %21 = vector.broadcast %cst : f32 to vector<1x1xf32>
      %22 = arith.divf %21, %20 : vector<1x1xf32>
      %c0_11 = arith.constant 0 : index
      %c0_12 = arith.constant 0 : index
      %23 = vector.load %arg8[%c0_11, %c0_12] : memref<1x16xf32, #tpu.memory_space<vmem>>, vector<1x16xf32>
      %c0_13 = arith.constant 0 : index
      %c0_14 = arith.constant 0 : index
      %c0_15 = arith.constant 0 : index
      %24 = vector.load %arg17[%c0_13, %c0_14, %c0_15] : memref<3x1x1xf32, #tpu.memory_space<vmem>>, vector<1x1x1xf32>
      %25 = vector.shape_cast %24 : vector<1x1x1xf32> to vector<1x1xf32>
      %26 = arith.mulf %25, %22 : vector<1x1xf32>
      %c0_16 = arith.constant 0 : index
      %c0_17 = arith.constant 0 : index
      %27 = vector.load %arg7[%c0_16, %c0_17] : memref<3x16xf32, #tpu.memory_space<vmem>>, vector<1x16xf32>
      %28 = vector.broadcast %26 : vector<1x1xf32> to vector<1x16xf32>
      %29 = arith.mulf %28, %27 : vector<1x16xf32>
      %30 = arith.addf %23, %29 : vector<1x16xf32>
      %c1 = arith.constant 1 : index
      %c0_18 = arith.constant 0 : index
      %c0_19 = arith.constant 0 : index
      %31 = vector.load %arg17[%c1, %c0_18, %c0_19] : memref<3x1x1xf32, #tpu.memory_space<vmem>>, vector<1x1x1xf32>
      %32 = vector.shape_cast %31 : vector<1x1x1xf32> to vector<1x1xf32>
      %33 = arith.mulf %32, %22 : vector<1x1xf32>
      %c1_20 = arith.constant 1 : index
      %c0_21 = arith.constant 0 : index
      %34 = vector.load %arg7[%c1_20, %c0_21] : memref<3x16xf32, #tpu.memory_space<vmem>>, vector<1x16xf32>
      %35 = vector.broadcast %33 : vector<1x1xf32> to vector<1x16xf32>
      %36 = arith.mulf %35, %34 : vector<1x16xf32>
      %37 = arith.addf %30, %36 : vector<1x16xf32>
      %c2 = arith.constant 2 : index
      %c0_22 = arith.constant 0 : index
      %c0_23 = arith.constant 0 : index
      %38 = vector.load %arg17[%c2, %c0_22, %c0_23] : memref<3x1x1xf32, #tpu.memory_space<vmem>>, vector<1x1x1xf32>
      %39 = vector.shape_cast %38 : vector<1x1x1xf32> to vector<1x1xf32>
      %40 = arith.mulf %39, %22 : vector<1x1xf32>
      %c2_24 = arith.constant 2 : index
      %c0_25 = arith.constant 0 : index
      %41 = vector.load %arg7[%c2_24, %c0_25] : memref<3x16xf32, #tpu.memory_space<vmem>>, vector<1x16xf32>
      %42 = vector.broadcast %40 : vector<1x1xf32> to vector<1x16xf32>
      %43 = arith.mulf %42, %41 : vector<1x16xf32>
      %44 = arith.addf %37, %43 : vector<1x16xf32>
      %c0_26 = arith.constant 0 : index
      %c0_27 = arith.constant 0 : index
      %c0_28 = arith.constant 0 : index
      %45 = vector.load %arg4[%c0_26, %c0_27, %c0_28] : memref<1x16x1xf32, #tpu.memory_space<vmem>>, vector<1x16x1xf32>
      %46 = vector.shape_cast %45 : vector<1x16x1xf32> to vector<16x1xf32>
      %c0_29 = arith.constant 0 : index
      %c0_30 = arith.constant 0 : index
      %47 = vector.load %arg9[%c0_29, %c0_30] : memref<16x16xf32, #tpu.memory_space<vmem>>, vector<16x16xf32>
      %48 = vector.broadcast %46 : vector<16x1xf32> to vector<16x16xf32>
      %49 = arith.mulf %47, %48 : vector<16x16xf32>
      %cst_31 = arith.constant dense<0.000000e+00> : vector<16xf32>
      %50 = vector.multi_reduction <add>, %49, %cst_31 [0] : vector<16x16xf32> to vector<16xf32>
      %51 = vector.shape_cast %50 : vector<16xf32> to vector<1x16xf32>
      %c0_32 = arith.constant 0 : index
      %c0_33 = arith.constant 0 : index
      %52 = vector.load %arg10[%c0_32, %c0_33] : memref<1x16xf32, #tpu.memory_space<vmem>>, vector<1x16xf32>
      %53 = arith.addf %51, %52 : vector<1x16xf32>
      %54 = arith.mulf %53, %44 : vector<1x16xf32>
      %c0_34 = arith.constant 0 : index
      %c0_35 = arith.constant 0 : index
      %55 = vector.load %arg11[%c0_34, %c0_35] : memref<3x16xf32, #tpu.memory_space<vmem>>, vector<1x16xf32>
      %56 = arith.mulf %54, %55 : vector<1x16xf32>
      %cst_36 = arith.constant dense<0.000000e+00> : vector<1xf32>
      %57 = vector.multi_reduction <add>, %56, %cst_36 [1] : vector<1x16xf32> to vector<1xf32>
      %58 = vector.shape_cast %57 : vector<1xf32> to vector<1x1xf32>
      %c0_37 = arith.constant 0 : index
      %c0_38 = arith.constant 0 : index
      %59 = memref.load %arg12[%c0_37, %c0_38] : memref<1x3xf32, #tpu.memory_space<smem>>
      %60 = vector.broadcast %59 : f32 to vector<1x1xf32>
      %61 = arith.addf %58, %60 : vector<1x1xf32>
      %c0_39 = arith.constant 0 : index
      %c0_40 = arith.constant 0 : index
      %c0_41 = arith.constant 0 : index
      %62 = vector.load %arg18[%c0_39, %c0_40, %c0_41] : memref<3x1x1xf32, #tpu.memory_space<vmem>>, vector<1x1x1xf32>
      %63 = vector.shape_cast %62 : vector<1x1x1xf32> to vector<1x1xf32>
      %64 = vector.shape_cast %61 : vector<1x1xf32> to vector<1x1x1xf32>
      tpu.vector_store %arg18[%c0_39, %c0_40, %c0_41], %64 {strides = array<i32>} : memref<3x1x1xf32, #tpu.memory_space<vmem>>, vector<1x1x1xf32>,
      %c1_42 = arith.constant 1 : index
      %c0_43 = arith.constant 0 : index
      %65 = vector.load %arg11[%c1_42, %c0_43] : memref<3x16xf32, #tpu.memory_space<vmem>>, vector<1x16xf32>
      %66 = arith.mulf %54, %65 : vector<1x16xf32>
      %cst_44 = arith.constant dense<0.000000e+00> : vector<1xf32>
      %67 = vector.multi_reduction <add>, %66, %cst_44 [1] : vector<1x16xf32> to vector<1xf32>
      %68 = vector.shape_cast %67 : vector<1xf32> to vector<1x1xf32>
      %c0_45 = arith.constant 0 : index
      %c1_46 = arith.constant 1 : index
      %69 = memref.load %arg12[%c0_45, %c1_46] : memref<1x3xf32, #tpu.memory_space<smem>>
      %70 = vector.broadcast %69 : f32 to vector<1x1xf32>
      %71 = arith.addf %68, %70 : vector<1x1xf32>
      %c1_47 = arith.constant 1 : index
      %c0_48 = arith.constant 0 : index
      %c0_49 = arith.constant 0 : index
      %72 = vector.load %arg18[%c1_47, %c0_48, %c0_49] : memref<3x1x1xf32, #tpu.memory_space<vmem>>, vector<1x1x1xf32>
      %73 = vector.shape_cast %72 : vector<1x1x1xf32> to vector<1x1xf32>
      %74 = vector.shape_cast %71 : vector<1x1xf32> to vector<1x1x1xf32>
      tpu.vector_store %arg18[%c1_47, %c0_48, %c0_49], %74 {strides = array<i32>} : memref<3x1x1xf32, #tpu.memory_space<vmem>>, vector<1x1x1xf32>,
      %c2_50 = arith.constant 2 : index
      %c0_51 = arith.constant 0 : index
      %75 = vector.load %arg11[%c2_50, %c0_51] : memref<3x16xf32, #tpu.memory_space<vmem>>, vector<1x16xf32>
      %76 = arith.mulf %54, %75 : vector<1x16xf32>
      %cst_52 = arith.constant dense<0.000000e+00> : vector<1xf32>
      %77 = vector.multi_reduction <add>, %76, %cst_52 [1] : vector<1x16xf32> to vector<1xf32>
      %78 = vector.shape_cast %77 : vector<1xf32> to vector<1x1xf32>
      %c0_53 = arith.constant 0 : index
      %c2_54 = arith.constant 2 : index
      %79 = memref.load %arg12[%c0_53, %c2_54] : memref<1x3xf32, #tpu.memory_space<smem>>
      %80 = vector.broadcast %79 : f32 to vector<1x1xf32>
      %81 = arith.addf %78, %80 : vector<1x1xf32>
      %c2_55 = arith.constant 2 : index
      %c0_56 = arith.constant 0 : index
      %c0_57 = arith.constant 0 : index
      %82 = vector.load %arg18[%c2_55, %c0_56, %c0_57] : memref<3x1x1xf32, #tpu.memory_space<vmem>>, vector<1x1x1xf32>
      %83 = vector.shape_cast %82 : vector<1x1x1xf32> to vector<1x1xf32>
      %84 = vector.shape_cast %81 : vector<1x1xf32> to vector<1x1x1xf32>
      tpu.vector_store %arg18[%c2_55, %c0_56, %c0_57], %84 {strides = array<i32>} : memref<3x1x1xf32, #tpu.memory_space<vmem>>, vector<1x1x1xf32>,
    } else {
    }
    %c1_i32 = arith.constant 1 : i32
    %13 = arith.cmpi eq, %arg1, %c1_i32 : i32
    %14 = arith.extui %13 : i1 to i32
    %c0_i32_7 = arith.constant 0 : i32
    %15 = arith.cmpi ne, %14, %c0_i32_7 : i32
    scf.if %15 {
      %c0 = arith.constant 0 : index
      %c0_10 = arith.constant 0 : index
      %20 = memref.load %arg13[%c0, %c0_10] : memref<3x3xf32, #tpu.memory_space<smem>>
      %c0_11 = arith.constant 0 : index
      %c0_12 = arith.constant 0 : index
      %c0_13 = arith.constant 0 : index
      %c0_14 = arith.constant 0 : index
      %21 = vector.load %arg3[%c0_11, %c0_12, %c0_13, %c0_14] : memref<1x3x2x128xf32, #tpu.memory_space<vmem>>, vector<1x1x2x128xf32>
      %22 = vector.shape_cast %21 : vector<1x1x2x128xf32> to vector<2x128xf32>
      %23 = vector.broadcast %20 : f32 to vector<2x128xf32>
      %24 = arith.mulf %23, %22 : vector<2x128xf32>
      %c0_15 = arith.constant 0 : index
      %c1 = arith.constant 1 : index
      %25 = memref.load %arg13[%c0_15, %c1] : memref<3x3xf32, #tpu.memory_space<smem>>
      %c0_16 = arith.constant 0 : index
      %c1_17 = arith.constant 1 : index
      %c0_18 = arith.constant 0 : index
      %c0_19 = arith.constant 0 : index
      %26 = vector.load %arg3[%c0_16, %c1_17, %c0_18, %c0_19] : memref<1x3x2x128xf32, #tpu.memory_space<vmem>>, vector<1x1x2x128xf32>
      %27 = vector.shape_cast %26 : vector<1x1x2x128xf32> to vector<2x128xf32>
      %28 = vector.broadcast %25 : f32 to vector<2x128xf32>
      %29 = arith.mulf %28, %27 : vector<2x128xf32>
      %30 = arith.addf %24, %29 : vector<2x128xf32>
      %c0_20 = arith.constant 0 : index
      %c2 = arith.constant 2 : index
      %31 = memref.load %arg13[%c0_20, %c2] : memref<3x3xf32, #tpu.memory_space<smem>>
      %c0_21 = arith.constant 0 : index
      %c2_22 = arith.constant 2 : index
      %c0_23 = arith.constant 0 : index
      %c0_24 = arith.constant 0 : index
      %32 = vector.load %arg3[%c0_21, %c2_22, %c0_23, %c0_24] : memref<1x3x2x128xf32, #tpu.memory_space<vmem>>, vector<1x1x2x128xf32>
      %33 = vector.shape_cast %32 : vector<1x1x2x128xf32> to vector<2x128xf32>
      %34 = vector.broadcast %31 : f32 to vector<2x128xf32>
      %35 = arith.mulf %34, %33 : vector<2x128xf32>
      %36 = arith.addf %30, %35 : vector<2x128xf32>
      %c0_25 = arith.constant 0 : index
      %c0_26 = arith.constant 0 : index
      %c0_27 = arith.constant 0 : index
      %37 = vector.load %arg18[%c0_25, %c0_26, %c0_27] : memref<3x1x1xf32, #tpu.memory_space<vmem>>, vector<1x1x1xf32>
      %38 = vector.shape_cast %37 : vector<1x1x1xf32> to vector<1x1xf32>
      %39 = vector.broadcast %38 : vector<1x1xf32> to vector<2x128xf32>
      %40 = arith.addf %36, %39 : vector<2x128xf32>
      %41 = arith.negf %40 : vector<2x128xf32>
      %42 = math.exp %41 : vector<2x128xf32>
      %cst = arith.constant 1.000000e+00 : f32
      %43 = vector.broadcast %cst : f32 to vector<2x128xf32>
      %44 = arith.addf %43, %42 : vector<2x128xf32>
      %45 = arith.divf %43, %44 : vector<2x128xf32>
      %46 = arith.mulf %40, %45 : vector<2x128xf32>
      %c1_28 = arith.constant 1 : index
      %c0_29 = arith.constant 0 : index
      %47 = memref.load %arg13[%c1_28, %c0_29] : memref<3x3xf32, #tpu.memory_space<smem>>
      %c0_30 = arith.constant 0 : index
      %c0_31 = arith.constant 0 : index
      %c0_32 = arith.constant 0 : index
      %c0_33 = arith.constant 0 : index
      %48 = vector.load %arg3[%c0_30, %c0_31, %c0_32, %c0_33] : memref<1x3x2x128xf32, #tpu.memory_space<vmem>>, vector<1x1x2x128xf32>
      %49 = vector.shape_cast %48 : vector<1x1x2x128xf32> to vector<2x128xf32>
      %50 = vector.broadcast %47 : f32 to vector<2x128xf32>
      %51 = arith.mulf %50, %49 : vector<2x128xf32>
      %c1_34 = arith.constant 1 : index
      %c1_35 = arith.constant 1 : index
      %52 = memref.load %arg13[%c1_34, %c1_35] : memref<3x3xf32, #tpu.memory_space<smem>>
      %c0_36 = arith.constant 0 : index
      %c1_37 = arith.constant 1 : index
      %c0_38 = arith.constant 0 : index
      %c0_39 = arith.constant 0 : index
      %53 = vector.load %arg3[%c0_36, %c1_37, %c0_38, %c0_39] : memref<1x3x2x128xf32, #tpu.memory_space<vmem>>, vector<1x1x2x128xf32>
      %54 = vector.shape_cast %53 : vector<1x1x2x128xf32> to vector<2x128xf32>
      %55 = vector.broadcast %52 : f32 to vector<2x128xf32>
      %56 = arith.mulf %55, %54 : vector<2x128xf32>
      %57 = arith.addf %51, %56 : vector<2x128xf32>
      %c1_40 = arith.constant 1 : index
      %c2_41 = arith.constant 2 : index
      %58 = memref.load %arg13[%c1_40, %c2_41] : memref<3x3xf32, #tpu.memory_space<smem>>
      %c0_42 = arith.constant 0 : index
      %c2_43 = arith.constant 2 : index
      %c0_44 = arith.constant 0 : index
      %c0_45 = arith.constant 0 : index
      %59 = vector.load %arg3[%c0_42, %c2_43, %c0_44, %c0_45] : memref<1x3x2x128xf32, #tpu.memory_space<vmem>>, vector<1x1x2x128xf32>
      %60 = vector.shape_cast %59 : vector<1x1x2x128xf32> to vector<2x128xf32>
      %61 = vector.broadcast %58 : f32 to vector<2x128xf32>
      %62 = arith.mulf %61, %60 : vector<2x128xf32>
      %63 = arith.addf %57, %62 : vector<2x128xf32>
      %c1_46 = arith.constant 1 : index
      %c0_47 = arith.constant 0 : index
      %c0_48 = arith.constant 0 : index
      %64 = vector.load %arg18[%c1_46, %c0_47, %c0_48] : memref<3x1x1xf32, #tpu.memory_space<vmem>>, vector<1x1x1xf32>
      %65 = vector.shape_cast %64 : vector<1x1x1xf32> to vector<1x1xf32>
      %66 = vector.broadcast %65 : vector<1x1xf32> to vector<2x128xf32>
      %67 = arith.addf %63, %66 : vector<2x128xf32>
      %68 = arith.negf %67 : vector<2x128xf32>
      %69 = math.exp %68 : vector<2x128xf32>
      %cst_49 = arith.constant 1.000000e+00 : f32
      %70 = vector.broadcast %cst_49 : f32 to vector<2x128xf32>
      %71 = arith.addf %70, %69 : vector<2x128xf32>
      %72 = arith.divf %70, %71 : vector<2x128xf32>
      %73 = arith.mulf %67, %72 : vector<2x128xf32>
      %74 = arith.addf %46, %73 : vector<2x128xf32>
      %c2_50 = arith.constant 2 : index
      %c0_51 = arith.constant 0 : index
      %75 = memref.load %arg13[%c2_50, %c0_51] : memref<3x3xf32, #tpu.memory_space<smem>>
      %c0_52 = arith.constant 0 : index
      %c0_53 = arith.constant 0 : index
      %c0_54 = arith.constant 0 : index
      %c0_55 = arith.constant 0 : index
      %76 = vector.load %arg3[%c0_52, %c0_53, %c0_54, %c0_55] : memref<1x3x2x128xf32, #tpu.memory_space<vmem>>, vector<1x1x2x128xf32>
      %77 = vector.shape_cast %76 : vector<1x1x2x128xf32> to vector<2x128xf32>
      %78 = vector.broadcast %75 : f32 to vector<2x128xf32>
      %79 = arith.mulf %78, %77 : vector<2x128xf32>
      %c2_56 = arith.constant 2 : index
      %c1_57 = arith.constant 1 : index
      %80 = memref.load %arg13[%c2_56, %c1_57] : memref<3x3xf32, #tpu.memory_space<smem>>
      %c0_58 = arith.constant 0 : index
      %c1_59 = arith.constant 1 : index
      %c0_60 = arith.constant 0 : index
      %c0_61 = arith.constant 0 : index
      %81 = vector.load %arg3[%c0_58, %c1_59, %c0_60, %c0_61] : memref<1x3x2x128xf32, #tpu.memory_space<vmem>>, vector<1x1x2x128xf32>
      %82 = vector.shape_cast %81 : vector<1x1x2x128xf32> to vector<2x128xf32>
      %83 = vector.broadcast %80 : f32 to vector<2x128xf32>
      %84 = arith.mulf %83, %82 : vector<2x128xf32>
      %85 = arith.addf %79, %84 : vector<2x128xf32>
      %c2_62 = arith.constant 2 : index
      %c2_63 = arith.constant 2 : index
      %86 = memref.load %arg13[%c2_62, %c2_63] : memref<3x3xf32, #tpu.memory_space<smem>>
      %c0_64 = arith.constant 0 : index
      %c2_65 = arith.constant 2 : index
      %c0_66 = arith.constant 0 : index
      %c0_67 = arith.constant 0 : index
      %87 = vector.load %arg3[%c0_64, %c2_65, %c0_66, %c0_67] : memref<1x3x2x128xf32, #tpu.memory_space<vmem>>, vector<1x1x2x128xf32>
      %88 = vector.shape_cast %87 : vector<1x1x2x128xf32> to vector<2x128xf32>
      %89 = vector.broadcast %86 : f32 to vector<2x128xf32>
      %90 = arith.mulf %89, %88 : vector<2x128xf32>
      %91 = arith.addf %85, %90 : vector<2x128xf32>
      %c2_68 = arith.constant 2 : index
      %c0_69 = arith.constant 0 : index
      %c0_70 = arith.constant 0 : index
      %92 = vector.load %arg18[%c2_68, %c0_69, %c0_70] : memref<3x1x1xf32, #tpu.memory_space<vmem>>, vector<1x1x1xf32>
      %93 = vector.shape_cast %92 : vector<1x1x1xf32> to vector<1x1xf32>
      %94 = vector.broadcast %93 : vector<1x1xf32> to vector<2x128xf32>
      %95 = arith.addf %91, %94 : vector<2x128xf32>
      %96 = arith.negf %95 : vector<2x128xf32>
      %97 = math.exp %96 : vector<2x128xf32>
      %cst_71 = arith.constant 1.000000e+00 : f32
      %98 = vector.broadcast %cst_71 : f32 to vector<2x128xf32>
      %99 = arith.addf %98, %97 : vector<2x128xf32>
      %100 = arith.divf %98, %99 : vector<2x128xf32>
      %101 = arith.mulf %95, %100 : vector<2x128xf32>
      %102 = arith.addf %74, %101 : vector<2x128xf32>
      %c0_72 = arith.constant 0 : index
      %c0_73 = arith.constant 0 : index
      %103 = vector.load %arg19[%c0_72, %c0_73] : memref<1x1xf32, #tpu.memory_space<vmem>>, vector<1x1xf32>
      %cst_74 = arith.constant dense<0.000000e+00> : vector<128xf32>
      %104 = vector.multi_reduction <add>, %102, %cst_74 [0] : vector<2x128xf32> to vector<128xf32>
      %105 = vector.shape_cast %104 : vector<128xf32> to vector<1x128xf32>
      %cst_75 = arith.constant dense<0.000000e+00> : vector<1xf32>
      %106 = vector.multi_reduction <add>, %105, %cst_75 [1] : vector<1x128xf32> to vector<1xf32>
      %107 = vector.shape_cast %106 : vector<1xf32> to vector<1x1xf32>
      %108 = arith.addf %103, %107 : vector<1x1xf32>
      %c0_76 = arith.constant 0 : index
      %c0_77 = arith.constant 0 : index
      %109 = vector.load %arg19[%c0_76, %c0_77] : memref<1x1xf32, #tpu.memory_space<vmem>>, vector<1x1xf32>
      tpu.vector_store %arg19[%c0_76, %c0_77], %108 {strides = array<i32>} : memref<1x1xf32, #tpu.memory_space<vmem>>, vector<1x1xf32>,
    } else {
    }
    %c1_i32_8 = arith.constant 1 : i32
    %16 = arith.cmpi eq, %arg1, %c1_i32_8 : i32
    %17 = arith.andi %16, %0 : i1
    %18 = arith.extui %17 : i1 to i32
    %c0_i32_9 = arith.constant 0 : i32
    %19 = arith.cmpi ne, %18, %c0_i32_9 : i32
    scf.if %19 {
      %c0 = arith.constant 0 : index
      %c0_10 = arith.constant 0 : index
      %20 = vector.load %arg19[%c0, %c0_10] : memref<1x1xf32, #tpu.memory_space<vmem>>, vector<1x1xf32>
      %cst = arith.constant 0.00130208337 : f32
      %21 = vector.broadcast %cst : f32 to vector<1x1xf32>
      %22 = arith.mulf %20, %21 : vector<1x1xf32>
      %c0_11 = arith.constant 0 : index
      %c0_12 = arith.constant 0 : index
      %c0_13 = arith.constant 0 : index
      %23 = vector.load %arg14[%c0_11, %c0_12, %c0_13] : memref<1x1x1xf32, #tpu.memory_space<vmem>>, vector<1x1x1xf32>
      %24 = vector.shape_cast %23 : vector<1x1x1xf32> to vector<1x1xf32>
      %25 = vector.shape_cast %22 : vector<1x1xf32> to vector<1x1x1xf32>
      tpu.vector_store %arg14[%c0_11, %c0_12, %c0_13], %25 {strides = array<i32>} : memref<1x1x1xf32, #tpu.memory_space<vmem>>, vector<1x1x1xf32>,
    } else {
    }
    return
  }
  func.func @transform_0(%arg0: i32, %arg1: i32, %arg2: i32) -> (i32, i32, i32, i32) {
    %c0_i32 = arith.constant 0 : i32
    %c0_i32_0 = arith.constant 0 : i32
    %c0_i32_1 = arith.constant 0 : i32
    return %arg0, %c0_i32, %arg2, %c0_i32_0 : i32, i32, i32, i32
  }
  func.func @transform_1(%arg0: i32, %arg1: i32, %arg2: i32) -> (i32, i32, i32) {
    %c0_i32 = arith.constant 0 : i32
    %c0_i32_0 = arith.constant 0 : i32
    %c0_i32_1 = arith.constant 0 : i32
    return %arg0, %c0_i32, %c0_i32_0 : i32, i32, i32
  }
  func.func @transform_2(%arg0: i32, %arg1: i32, %arg2: i32) -> (i32, i32) {
    %c0_i32 = arith.constant 0 : i32
    %c0_i32_0 = arith.constant 0 : i32
    %c0_i32_1 = arith.constant 0 : i32
    return %c0_i32, %c0_i32_0 : i32, i32
  }
  func.func @transform_3(%arg0: i32, %arg1: i32, %arg2: i32) -> (i32, i32) {
    %c0_i32 = arith.constant 0 : i32
    %c0_i32_0 = arith.constant 0 : i32
    %c0_i32_1 = arith.constant 0 : i32
    return %c0_i32, %c0_i32_0 : i32, i32
  }
  func.func @transform_4(%arg0: i32, %arg1: i32, %arg2: i32) -> (i32, i32) {
    %c0_i32 = arith.constant 0 : i32
    %c0_i32_0 = arith.constant 0 : i32
    %c0_i32_1 = arith.constant 0 : i32
    return %c0_i32, %c0_i32_0 : i32, i32
  }
  func.func @transform_5(%arg0: i32, %arg1: i32, %arg2: i32) -> (i32, i32) {
    %c0_i32 = arith.constant 0 : i32
    %c0_i32_0 = arith.constant 0 : i32
    %c0_i32_1 = arith.constant 0 : i32
    return %c0_i32, %c0_i32_0 : i32, i32
  }
  func.func @transform_6(%arg0: i32, %arg1: i32, %arg2: i32) -> (i32, i32) {
    %c0_i32 = arith.constant 0 : i32
    %c0_i32_0 = arith.constant 0 : i32
    %c0_i32_1 = arith.constant 0 : i32
    return %c0_i32, %c0_i32_0 : i32, i32
  }
  func.func @transform_7(%arg0: i32, %arg1: i32, %arg2: i32) -> (i32, i32) {
    %c0_i32 = arith.constant 0 : i32
    %c0_i32_0 = arith.constant 0 : i32
    %c0_i32_1 = arith.constant 0 : i32
    return %c0_i32, %c0_i32_0 : i32, i32
  }
  func.func @transform_8(%arg0: i32, %arg1: i32, %arg2: i32) -> (i32, i32) {
    %c0_i32 = arith.constant 0 : i32
    %c0_i32_0 = arith.constant 0 : i32
    %c0_i32_1 = arith.constant 0 : i32
    return %c0_i32, %c0_i32_0 : i32, i32
  }
  func.func @transform_9(%arg0: i32, %arg1: i32, %arg2: i32) -> (i32, i32) {
    %c0_i32 = arith.constant 0 : i32
    %c0_i32_0 = arith.constant 0 : i32
    %c0_i32_1 = arith.constant 0 : i32
    return %c0_i32, %c0_i32_0 : i32, i32
  }
  func.func @transform_10(%arg0: i32, %arg1: i32, %arg2: i32) -> (i32, i32) {
    %c0_i32 = arith.constant 0 : i32
    %c0_i32_0 = arith.constant 0 : i32
    %c0_i32_1 = arith.constant 0 : i32
    return %c0_i32, %c0_i32_0 : i32, i32
  }
  func.func @transform_11(%arg0: i32, %arg1: i32, %arg2: i32) -> (i32, i32, i32) {
    %c0_i32 = arith.constant 0 : i32
    %c0_i32_0 = arith.constant 0 : i32
    %c0_i32_1 = arith.constant 0 : i32
    return %arg0, %c0_i32, %c0_i32_0 : i32, i32, i32
  }
}

</mosaic_0001>

<bundles_post_ra>
// kernel: denim_forward.1
= control target key start
LH: loop header
LB: loop body
LE: loop exit
PB: predicated region body
PF: predicated region fallthrough
CT: control target
= control target key end

     0   :  { %s1447_s0 = inlined_call_operand.vmem [shape: f32[2,3,2,128], index: 0, kind: input, shape index: {}]   ;;  %s1448_s1 = inlined_call_operand.vmem [shape: f32[2,16,1], index: 1, kind: input, shape index: {}]   ;;  %s1449_s2 = inlined_call_operand.vmem [shape: f32[3,1], index: 2, kind: input, shape index: {}]   ;;  %s1450_s3 = inlined_call_operand.<no memory space> [shape: f32[1,1], index: 3, kind: input, shape index: {}]   ;;  %s1451_s4 = inlined_call_operand.vmem [shape: f32[3,16], index: 4, kind: input, shape index: {}]   ;;  %s1452_s5 = inlined_call_operand.vmem [shape: f32[1,16], index: 5, kind: input, shape index: {}]   ;;  %s1453_s6 = inlined_call_operand.vmem [shape: f32[16,16], index: 6, kind: input, shape index: {}]   ;;  %s1454_s7 = inlined_call_operand.vmem [shape: f32[1,16], index: 7, kind: input, shape index: {}]   ;;  %s1455_s8 = inlined_call_operand.vmem [shape: f32[3,16], index: 8, kind: input, shape index: {}]   ;;  %s1456_s9 = inlined_call_operand.vmem [shape: f32[1,3], index: 9, kind: input, shape index: {}]   ;;  %s1457_s10 = inlined_call_operand.vmem [shape: f32[3,3], index: 10, kind: input, shape index: {}]   ;;  %s1458_s11 = inlined_call_operand.vmem [shape: f32[2,1,1], index: 11, kind: output, shape index: {}]  }
   0x1   :  { %16 = sst [smem:[#allocation7]] %s1450_s3 }
   0x2   :  { %17 = vsyncpa [#allocation9], 0 }
   0x3   :  { %18 = vsyncpa [#allocation11], 0  ;;  %s1251_s19 = smov 0   ;;  %s1253_s20 = smov 0  }
   0x4   :  { %s1255_s21 = smov 0   ;;  %s1257_s22 = smov 0  }
   0x5   :  { %s1259_s23 = smov 0  }
   0x6 LB: > { %s359_s25 = sshll.u32 %s1456_s9, 4  ;;  %s940_s26 = sadd.s32 4294967295, %s1178_s23   ;;  %s1178_s23 = sphi %s1259_s23, %s24_s23   ;;  %s1174_s22 = sphi %s1257_s22, %s1471_s22   ;;  %s1170_s21 = sphi %s1255_s21, %s1470_s21   ;;  %s1166_s20 = sphi %s1253_s20, %s1469_s20   ;;  %s1162_s19 = sphi %s1251_s19, %s1468_s19   ;;  %s360_s25 = int_to_ptr.vmem [resolvable:$true] %s359_s25 }
   0x7   : > { %p942_p0 = scmp.ge.s32.totalorder %s1178_s23, 1  ;;  %p317_p1 = scmp.lt.s32.totalorder %s1178_s23, 5 }
   0x8   : > { %p1282_p2 = scmp.eq.s32.totalorder %s940_s26, 0  ;;  %s39_s30 = sadd.s32 1, %s1170_s21 }
   0x9   : > { %p1286_p3 = pnand %p942_p0, %p317_p1  ;;  %p1299_p6 = scmp.ge.s32.totalorder %s39_s30, 2 }
   0xa   : > { %s1462_s27 = scalar_select %p1282_p2, 1, 0 }
   0xb   : > { %s1463_s28 = scalar_select %p1286_p3, 1, 0 }
   0xc   : > { %p1000_p4 = pneg %p1286_p3  ;;  %s1087_s13 = scalar_lea.vmem %s360_s25, 16 }
   0xd   : > { %p1088_p7 = scmp.ne.s32.totalorder %s360_s25, %s1087_s13  ;;  %p1095_p11 = scmp.lt.s32.totalorder %s360_s25, %s360_s25 }
   0xe   : > { %p1294_p5 = pnand %p1282_p2, %p1000_p4  ;;  %p1096_p12 = scmp.lt.s32.totalorder %s1087_s13, %s1087_s13 }
  0x10   : > { %p1089_p8 = pneg %p1294_p5  ;;  %p1097_p13 = por %p1096_p12, %p1095_p11 }
  0x12   : > { %p1090_p9 = pnand %p1089_p8, %p1088_p7 }
  0x14   : > { %p1091_p10 = pneg %p1090_p9 }
  0x16   : > { %p1098_p0 = pnand %p1097_p13, %p1091_p10 }
  0x18   : > { %1101 = shalt.err (!%p1098_p0)
}
  0x19   : > { %s1180_s14 = smov [#allocation10]   ;;  %s1473_s30 = smov (%p1299_p6, %s39_s30), 0 }
  0x1a   : > { %1006 = dma.vmem_to_smem (!%p1294_p5), %s360_s25, 16, %s1180_s14, [#allocation11]  }
  0x1b   : > { %s43_s15 = sadd.s32 1, %s1174_s22  ;;  %s330_s18 = sshll.u32 %s1449_s2, 4  ;;  %s331_s18 = int_to_ptr.vmem [resolvable:$true] %s330_s18 }
  0x1c   : > { %s1475_s15 = smov (!%p1299_p6, %s43_s15), %s1174_s22  ;;  %s370_s26 = sshll.u32 %s1457_s10, 4  ;;  %s371_s26 = int_to_ptr.vmem [resolvable:$true] %s370_s26 }
  0x1d   : > { %p45_p1 = scmp.ge.s32.totalorder %s1475_s15, 2  ;;  %s1102_s13 = scalar_lea.vmem %s331_s18, 64 }
  0x1e   : > { %p1103_p4 = scmp.ne.s32.totalorder %s331_s18, %s1102_s13  ;;  %p1110_p10 = scmp.lt.s32.totalorder %s331_s18, %s331_s18 }
  0x1f   : > { %p1111_p11 = scmp.lt.s32.totalorder %s1102_s13, %s1102_s13 }
  0x20   : > { %p1105_p7 = pnand %p1103_p4, %p1089_p8 }
  0x21   : > { %p1112_p12 = por %p1111_p11, %p1110_p10 }
  0x22   : > { %p1106_p9 = pneg %p1105_p7 }
  0x24   : > { %p1113_p13 = pnand %p1112_p12, %p1106_p9 }
  0x26   : > { %1116 = shalt.err (!%p1113_p13)
}
  0x27   : > { %s1181_s25 = smov [#allocation8]   ;;  %s1477_s15 = smov (%p45_p1, %s1475_s15), 0 }
  0x28   : > { %1003 = dma.vmem_to_smem (!%p1294_p5), %s331_s18, 64, %s1181_s25, [#allocation9]  }
  0x29   : > { %s1117_s12 = scalar_lea.vmem %s371_s26, 64  ;;  %p1125_p7 = scmp.lt.s32.totalorder %s371_s26, %s371_s26 }
  0x2a   : > { %p1118_p6 = scmp.ne.s32.totalorder %s371_s26, %s1117_s12  ;;  %p1126_p2 = scmp.lt.s32.totalorder %s1117_s12, %s1117_s12 }
  0x2c   : > { %p1120_p0 = pnand %p1118_p6, %p1089_p8  ;;  %p1127_p3 = por %p1126_p2, %p1125_p7 }
  0x2e   : > { %p1121_p4 = pneg %p1120_p0 }
  0x30   : > { %p1128_p10 = pnand %p1127_p3, %p1121_p4 }
  0x32   : > { %1131 = shalt.err (!%p1128_p10)
}
  0x33   : > { %s1182_s14 = smov [#allocation12]   ;;  %p1466_p9 = scmp.ne.s32.totalorder %s1463_s28, 0 }
  0x34   : > { %1009 = dma.vmem_to_smem (!%p1294_p5), %s371_s26, 64, %s1182_s14, [#allocation11]  }
  0x35   : > { %402 = sbr.rel (%p1466_p9) target bundleno = 1212 (0x4bc), region = 64  ;;  %p1467_p1 = scmp.ne.s32.totalorder (!%p1466_p9), %s1462_s27, 0 }
  0x3c   : > { %1153 = dma.done.wait (%p1467_p1), [#allocation9], 64  }
  0x3d   : > { %1155 = vsyncadd (%p1467_p1), [#allocation9], 4294967232 }
  0x3e   : > { %1157 = dma.done.wait (%p1467_p1), [#allocation11], 80  }
  0x3f   : > { %1159 = vsyncadd (%p1467_p1), [#allocation11], 4294967216 }
  0x40   : > { %416 = sfence }
  0x41   : > { %p457_p2 = scmp.lt.s32.totalorder %s1166_s20, 1  ;;  %p474_p3 = scmp.eq.s32.totalorder %s1162_s19, 0 }
  0x42   : > { %vm479_vm0 = vcmask (%p474_p3), 0   ;;  %v1183_v0 = vmov (%p474_p3), -1e+30   ;;  %v1184_v1 = vmov (%p474_p3), 0.0  }
  0x43   : > { %s1479_s20 = smov (!%p457_p2, %s1166_s20), 1  ;;  %478 = sbr.rel (!%p474_p3) target bundleno = 74 (0x4a), region = 80 }
  0x44   : > { %s987_s28 = smul.u32 6, %s1479_s20  ;;  %s984_s29 = sshll.u32 %s1479_s20, 4  ;;  %480 = vst.msk [vmem:[#allocation2] sm:$0x1] (%p474_p3), %vm479_vm0, %v1183_v0  ;;  %481 = vst.msk [vmem:[#allocation3] sm:$0x1] (%p474_p3), %vm479_vm0, %v1184_v1 }
  0x45   : > { %s1356_s18 = scalar_lea.vmem %s1448_s1, %s984_s29  ;;  %s472_s24 = scalar_lea.vmem %s1458_s11, %s1479_s20  ;;  %482 = vst.msk [vmem:[#allocation4] sm:$0x1] (%p474_p3), %vm479_vm0, %v1184_v1  ;;  %483 = vst.msk [vmem:[#allocation4 + $0x1] sm:$0x1] (%p474_p3), %vm479_vm0, %v1184_v1 }
  0x46   : > { %s1365_s25 = scalar_lea.vmem %s1447_s0, %s987_s28  ;;  %484 = vst.msk [vmem:[#allocation4 + $0x2] sm:$0x1] (%p474_p3), %vm479_vm0, %v1184_v1  ;;  %485 = vst.msk [vmem:[#allocation6] sm:$0x1] (%p474_p3), %vm479_vm0, %v1184_v1 }
  0x4a PF: > { %p955_p5 = scmp.ne.s32.totalorder %s1162_s19, 0 }
  0x4b   : > { %s489_s12 = sld [smem:[#allocation8]] (!%p955_p5)  ;;  %v490_v2 = vld [vmem:[%s1365_s25] sm:$0x3] (!%p955_p5)  ;;  %v957_v3 = vld [vmem:[%s1365_s25 + $0x2] sm:$0x3] (!%p955_p5)  ;;  %vm509_vm1 = vcmask (!%p955_p5), 1041408   ;;  %v524_v23 = vlaneseq (!%p955_p5) }
  0x4c   : > { %488 = sbr.rel (%p955_p5) target bundleno = 563 (0x233), region = 84  ;;  %s956_s14 = sld [smem:[#allocation8 + $0x80]] (!%p955_p5)  ;;  %v959_v4 = vld [vmem:[%s1365_s25 + $0x4] sm:$0x3] (!%p955_p5)  ;;  %v1185_v22 = vmov (!%p955_p5), 0   ;;  %vm547_vm2 = vcmask (!%p955_p5), 0  }
  0x4d   : > { %s958_s28 = sld [smem:[#allocation8 + $0x100]] (!%p955_p5)  ;;  %1064 = vset.pattern.permute.xlu0 (!%p955_p5), %v1185_v22  ;;  %v525_v24 = vshrl.u32 (!%p955_p5), %v524_v23, 7  ;;  %v508_v25 = vld [vmem:[#allocation2] sm:$0x1] (!%p955_p5)  ;;  %v960_v35 = vld [vmem:[%s1365_s25 + $0x2] sm:$0x3] (!%p955_p5) }
  0x4e   : > { %s505_s29 = sld [smem:[#allocation7]] (!%p955_p5)  ;;  %v551_v34 = vld [vmem:[%s1365_s25] sm:$0x3] (!%p955_p5)  ;;  %v961_v36 = vld [vmem:[%s1365_s25 + $0x4] sm:$0x3] (!%p955_p5) }
  0x4f   : > { %v526_v26 = vsub.s32 (!%p955_p5), 0, %v525_v24 }
  0x51   : > { %v491_v5 = vstv (!%p955_p5), %s489_s12 }
  0x52   : > { %v496_v6 = vstv (!%p955_p5), %s956_s14  ;;  %v492_v7 = vmul.f32 (!%p955_p5), %v491_v5, %v490_v2 }
  0x53   : > { %v497_v8 = vmul.f32 %v957_v3, %v496_v6  ;;  %v502_v9 = vstv %s958_s28 }
  0x54   : > { %v503_v10 = vmul.f32 %v959_v4, %v502_v9  ;;  %v506_v12 = vstv %s505_s29 }
  0x55   : > { %v498_v11 = vadd.f32 %v497_v8, %v492_v7  ;;  %v535_v7 = vld [vmem:[#allocation3] sm:$0x1] }
  0x57   : > { %v504_v13 = vadd.f32 %v503_v10, %v498_v11  ;;  %v549_v10 = vld [vmem:[#allocation4] sm:$0x1] }
  0x59   : > { %v507_v14 = vadd.f32 %v506_v12, %v504_v13 }
  0x5b   : > { %v510_v15 = vsel %vm509_vm1, %v507_v14, -inf }
  0x5c   : > { %v511_v16 = vrot.slane %v510_v15, 4 }
  0x5e   : > { %v512_v17 = vmax.f32 %v510_v15, %v511_v16 }
  0x60   : > { %v513_v18 = vrot.slane %v512_v17, 2 }
  0x62   : > { %v514_v19 = vmax.f32 %v512_v17, %v513_v18  ;;  %v581_v18 = vld [vmem:[#allocation4 + $0x2] sm:$0x1] }
  0x64   : > { %v515_v20 = vrot.slane %v514_v19, 1 }
  0x66   : > { %v516_v21 = vmax.f32 %v514_v19, %v515_v20 }
  0x68   : > { %517 = vmax.xlane.f32.xlu0 %v516_v21 }
  0xf5   : > { %v518_v27 = vpop.xlane.xlu0 %517 }
  0xf6   : > { %v519_v28 = vmax.f32 %v508_v25, %v518_v27 }
  0xf8   : > { %v520_v29 = vsub.f32 %v508_v25, %v519_v28  ;;  %596 = vst.msk [vmem:[#allocation2] sm:$0x1] %vm547_vm2, %v519_v28  ;;  %v527_v30 = vrot.slane %v519_v28, %v526_v26 }
  0xfa   : > { %529 = vperm.xlu0 %1064, %v527_v30   ;;  %v521_v5 = vmul.f32 1.442695, %v520_v29 }
 0x179   : > { %v530_v31 = vpop.permute.xlu0 %529 }
 0x17a   : > { %v532_v32 = vsub.f32 %v507_v14, %v530_v31  ;;  %v565_v14 = vld [vmem:[#allocation4 + $0x1] sm:$0x1] }
 0x17c   : > { %v533_v33 = vmul.f32 1.442695, %v532_v32 }
 0x17e   : > { %1065 = vpow2.f32 %v533_v33 }
 0x17f   : > { %1067 = vpow2.f32 %v521_v5 }
 0x188   : > { %v1066_v37 = vpop.eup %1065 }
 0x189   : > { %v537_v38 = vsel %vm509_vm1, %v1066_v37, 0.0  ;;  %v552_v39 = vmul.f32 %v1066_v37, %v551_v34  ;;  %v568_v40 = vmul.f32 %v1066_v37, %v960_v35  ;;  %v584_v41 = vmul.f32 %v1066_v37, %v961_v36  ;;  %v1068_v6 = vpop.eup %1067 }
 0x18a   : > { %v538_v42 = vrot.slane %v537_v38, 4  ;;  %v536_v8 = vmul.f32 %v1068_v6, %v535_v7  ;;  %v550_v12 = vmul.f32 %v1068_v6, %v549_v10  ;;  %v566_v16 = vmul.f32 %v1068_v6, %v565_v14 }
 0x18b   : > { %v553_v43 = vsel %vm509_vm1, %v552_v39, 0.0  ;;  %v569_v44 = vsel %vm509_vm1, %v568_v40, 0.0  ;;  %v585_v45 = vsel %vm509_vm1, %v584_v41, 0.0  ;;  %v582_v20 = vmul.f32 %v1068_v6, %v581_v18 }
 0x18c   : > { %v539_v46 = vadd.f32 %v538_v42, %v537_v38  ;;  %v554_v47 = vrot.slane %v553_v43, 4  ;;  %v570_v48 = vrot.slane %v569_v44, 4  ;;  %v586_v49 = vrot.slane %v585_v45, 4 }
 0x18e   : > { %v540_v50 = vrot.slane %v539_v46, 2  ;;  %v555_v51 = vadd.f32 %v554_v47, %v553_v43  ;;  %v571_v52 = vadd.f32 %v570_v48, %v569_v44  ;;  %v587_v56 = vadd.f32 %v586_v49, %v585_v45 }
 0x190   : > { %v541_v53 = vadd.f32 %v540_v50, %v539_v46  ;;  %v556_v54 = vrot.slane %v555_v51, 2  ;;  %v572_v55 = vrot.slane %v571_v52, 2  ;;  %v588_v62 = vrot.slane %v587_v56, 2 }
 0x192   : > { %v542_v57 = vrot.slane %v541_v53, 1  ;;  %v557_v58 = vadd.f32 %v556_v54, %v555_v51  ;;  %v573_v61 = vadd.f32 %v572_v55, %v571_v52  ;;  %v589_v1 = vadd.f32 %v588_v62, %v587_v56 }
 0x194   : > { %v543_v59 = vadd.f32 %v542_v57, %v541_v53  ;;  %v558_v60 = vrot.slane %v557_v58, 1  ;;  %v574_v0 = vrot.slane %v573_v61, 1  ;;  %v590_v3 = vrot.slane %v589_v1, 1 }
 0x196   : > { %544 = vadd.xlane.f32.xlu1 %v543_v59  ;;  %v559_v63 = vadd.f32 %v558_v60, %v557_v58  ;;  %v575_v2 = vadd.f32 %v574_v0, %v573_v61  ;;  %v591_v4 = vadd.f32 %v590_v3, %v589_v1 }
 0x19a   : > { %560 = vadd.xlane.f32.xlu1 %v559_v63 }
 0x19e   : > { %576 = vadd.xlane.f32.xlu1 %v575_v2 }
 0x1a2   : > { %592 = vadd.xlane.f32.xlu1 %v591_v4 }
 0x223   : > { %v545_v9 = vpop.xlane.xlu1 %544 }
 0x224   : > { %v546_v11 = vadd.f32 %v545_v9, %v536_v8 }
 0x226   : > { %548 = vst.msk [vmem:[#allocation3] sm:$0x1] %vm547_vm2, %v546_v11 }
 0x227   : > { %v561_v13 = vpop.xlane.xlu1 %560 }
 0x228   : > { %v562_v15 = vadd.f32 %v561_v13, %v550_v12 }
 0x22a   : > { %563 = vst.msk [vmem:[#allocation4] sm:$0x1] %vm547_vm2, %v562_v15 }
 0x22b   : > { %v577_v17 = vpop.xlane.xlu1 %576 }
 0x22c   : > { %v578_v19 = vadd.f32 %v577_v17, %v566_v16 }
 0x22e   : > { %579 = vst.msk [vmem:[#allocation4 + $0x1] sm:$0x1] %vm547_vm2, %v578_v19 }
 0x22f   : > { %v593_v21 = vpop.xlane.xlu1 %592 }
 0x230   : > { %v594_v22 = vadd.f32 %v593_v21, %v582_v20 }
 0x232   : > { %595 = vst.msk [vmem:[#allocation4 + $0x2] sm:$0x1] %vm547_vm2, %v594_v22 }
 0x233 PF: > { %598 = sbr.rel (!%p474_p3) target bundleno = 872 (0x368), region = 88  ;;  %v647_v23 = vld [vmem:[%s1356_s18] sm:$0xff] (%p474_p3)  ;;  %v1186_v25 = vmov (%p474_p3), 0   ;;  %v648_v26 = vld [vmem:[%s1356_s18 + $0x8] sm:$0xff] (%p474_p3)  ;;  %v611_v36 = vlaneseq (%p474_p3)  ;;  %vm663_vm3 = vcmask (%p474_p3), 130048   ;;  %vm678_vm4 = vcmask (%p474_p3), 122880  }
 0x234   : > { %v599_v24 = vld [vmem:[#allocation3] sm:$0x1] (%p474_p3)  ;;  %1069 = vset.pattern.permute.xlu0 (%p474_p3), %v1186_v25  ;;  %1070 = vset.pattern.permute.xlu1 (%p474_p3), %v1186_v25  ;;  %v603_v28 = vld [vmem:[#allocation4] sm:$0x1] (%p474_p3)  ;;  %v650_v37 = vld [vmem:[%s1453_s6 + $0x8] sm:$0xff] (%p474_p3)  ;;  %s962_s28 = sld [smem:[#allocation10 + $0x1]] (%p474_p3) }
 0x235   : > { %1071 = vrcp.f32 (%p474_p3), %v599_v24  ;;  %653 = vperm.xlu0 (%p474_p3), %1069, %v647_v23   ;;  %v618_v30 = vld [vmem:[#allocation4 + $0x1] sm:$0x1] (%p474_p3)  ;;  %v612_v41 = vshrl.u32 (%p474_p3), %v611_v36, 7  ;;  %v605_v48 = vld [vmem:[%s1451_s4] sm:$0x1] (%p474_p3)  ;;  %s682_s29 = sld [smem:[#allocation10]] (%p474_p3) }
 0x236   : > { %v649_v34 = vld [vmem:[%s1453_s6] sm:$0xff] (%p474_p3)  ;;  %s963_s16 = sld [smem:[#allocation10 + $0x2]] (%p474_p3)  ;;  %vm685_vm5 = vcmask (%p474_p3), 0  }
 0x237   : > { %v613_v45 = vsub.s32 (%p474_p3), 0, %v612_v41  ;;  %v602_v55 = vld [vmem:[%s1452_s5] sm:$0x1] (%p474_p3)  ;;  %v620_v56 = vld [vmem:[%s1451_s4 + $0x1] sm:$0x1] (%p474_p3) }
 0x238   : > { %v635_v61 = vld [vmem:[%s1451_s4 + $0x2] sm:$0x1] (%p474_p3)  ;;  %v673_v0 = vld [vmem:[%s1454_s7] sm:$0x1] (%p474_p3)  ;;  %v687_v6 = vld [vmem:[%s1455_s8 + $0x1] sm:$0x1] (%p474_p3) }
 0x239   : > { %658 = vperm.xlu0 (%p474_p3), %1069, %v648_v26   ;;  %v633_v27 = vld [vmem:[#allocation4 + $0x2] sm:$0x1] (%p474_p3)  ;;  %v676_v7 = vld [vmem:[%s1455_s8] sm:$0x1] (%p474_p3)  ;;  %v697_v9 = vld [vmem:[%s1455_s8 + $0x2] sm:$0x1] (%p474_p3) }
 0x23a   : > { %v693_v16 = vstv %s962_s28 }
 0x23b   : > { %v683_v17 = vstv %s682_s29 }
 0x23c   : > { %v703_v22 = vstv %s963_s16 }
 0x23f   : > { %v1072_v29 = vpop.eup %1071 }
 0x240   : > { %v634_v31 = vmul.f32 %v1072_v29, %v633_v27  ;;  %v604_v32 = vmul.f32 %v1072_v29, %v603_v28  ;;  %v619_v33 = vmul.f32 %v1072_v29, %v618_v30 }
 0x242   : > { %638 = vperm.xlu0 %1069, %v634_v31   ;;  %608 = vperm.xlu1 %1070, %v604_v32  }
 0x246   : > { %623 = vperm.xlu1 %1070, %v619_v33  }
 0x2b4   : > { %v654_v35 = vpop.permute.xlu0 %653 }
 0x2b5   : > { %v661_v38 = vmul.f32 %v654_v35, %v649_v34 }
 0x2b7   : > { %v664_v42 = vsel %vm663_vm3, %v661_v38, 0.0 }
 0x2b8   : > { %v659_v39 = vpop.permute.xlu0 %658 }
 0x2b9   : > { %v662_v40 = vmul.f32 %v659_v39, %v650_v37 }
 0x2bb   : > { %v665_v43 = vsel %vm663_vm3, %v662_v40, 0.0 }
 0x2bc   : > { %v666_v44 = vadd.f32 %v665_v43, %v664_v42 }
 0x2be   : > { %v667_v46 = vrot.slane %v666_v44, 4 }
 0x2c0   : > { %v668_v47 = vadd.f32 %v667_v46, %v666_v44 }
 0x2c1   : > { %v609_v49 = vpop.permute.xlu1 %608  ;;  %v639_v52 = vpop.permute.xlu0 %638 }
 0x2c2   : > { %v614_v50 = vrot.slane %v609_v49, %v613_v45  ;;  %v669_v51 = vrot.slane %v668_v47, 2  ;;  %v644_v58 = vrot.slane %v639_v52, %v613_v45 }
 0x2c4   : > { %v615_v53 = vmul.f32 %v614_v50, %v605_v48  ;;  %v670_v54 = vadd.f32 %v669_v51, %v668_v47  ;;  %v645_v2 = vmul.f32 %v644_v58, %v635_v61 }
 0x2c5   : > { %v624_v57 = vpop.permute.xlu1 %623 }
 0x2c6   : > { %v629_v59 = vrot.slane %v624_v57, %v613_v45  ;;  %v671_v60 = vrot.slane %v670_v54, 1  ;;  %v616_v62 = vadd.f32 %v615_v53, %v602_v55 }
 0x2c8   : > { %v630_v63 = vmul.f32 %v629_v59, %v620_v56  ;;  %v672_v1 = vadd.f32 %v671_v60, %v670_v54 }
 0x2ca   : > { %v631_v3 = vadd.f32 %v630_v63, %v616_v62  ;;  %v674_v4 = vadd.f32 %v673_v0, %v672_v1 }
 0x2cc   : > { %v646_v5 = vadd.f32 %v645_v2, %v631_v3 }
 0x2ce   : > { %v675_v8 = vmul.f32 %v674_v4, %v646_v5 }
 0x2d0   : > { %v688_v10 = vmul.f32 %v687_v6, %v675_v8  ;;  %v677_v11 = vmul.f32 %v676_v7, %v675_v8  ;;  %v698_v14 = vmul.f32 %v697_v9, %v675_v8 }
 0x2d2   : > { %v689_v12 = vsel %vm678_vm4, %v688_v10, 0.0  ;;  %v679_v13 = vsel %vm678_vm4, %v677_v11, 0.0  ;;  %v699_v15 = vsel %vm678_vm4, %v698_v14, 0.0 }
 0x2d3   : > { %690 = vadd.xlane.f32.xlu0 %v689_v12  ;;  %680 = vadd.xlane.f32.xlu1 %v679_v13 }
 0x2d7   : > { %700 = vadd.xlane.f32.xlu0 %v699_v15 }
 0x360   : > { %v691_v18 = vpop.xlane.xlu0 %690  ;;  %v681_v19 = vpop.xlane.xlu1 %680 }
 0x361   : > { %v694_v20 = vadd.f32 %v693_v16, %v691_v18  ;;  %v684_v21 = vadd.f32 %v683_v17, %v681_v19 }
 0x363   : > { %696 = vst.msk [vmem:[#allocation5 + $0x1] sm:$0x1] %vm685_vm5, %v694_v20  ;;  %686 = vst.msk [vmem:[#allocation5] sm:$0x1] %vm685_vm5, %v684_v21 }
 0x364   : > { %v701_v23 = vpop.xlane.xlu0 %700 }
 0x365   : > { %v704_v24 = vadd.f32 %v703_v22, %v701_v23 }
 0x367   : > { %706 = vst.msk [vmem:[#allocation5 + $0x2] sm:$0x1] %vm685_vm5, %v704_v24 }
 0x368 PF: > { %p707_p8 = scmp.eq.s32.totalorder %s1162_s19, 1  ;;  %p964_p11 = scmp.ne.s32.totalorder %s1162_s19, 1 }
 0x369   : > { %v1187_v27 = vmov (!%p964_p11), 0   ;;  %s976_s17 = sld [smem:[#allocation12 + $0x100]] (!%p964_p11)  ;;  %s977_s27 = sld [smem:[#allocation12 + $0x101]] (!%p964_p11)  ;;  %v712_v31 = vld [vmem:[%s1365_s25] sm:$0x3] (!%p964_p11)  ;;  %vm808_vm6 = vcmask (!%p964_p11), 1041408  }
 0x36a   : > { %710 = sbr.rel (%p964_p11) target bundleno = 1202 (0x4b2), region = 92  ;;  %v969_v26 = vld [vmem:[#allocation5] ss:$0 sm:$0xff] (!%p964_p11)  ;;  %1074 = vset.pattern.permute.xlu1 (!%p964_p11), %v1187_v27  ;;  %1073 = vset.pattern.permute.xlu0 (!%p964_p11), %v1187_v27  ;;  %v974_v28 = vld [vmem:[#allocation5 + $0x1] ss:$0 sm:$0xff] (!%p964_p11)  ;;  %s711_s3 = sld [smem:[#allocation12]] (!%p964_p11) }
 0x36b   : > { %734 = vperm.xlu0 (!%p964_p11), %1073, %v969_v26   ;;  %s965_s18 = sld [smem:[#allocation12 + $0x1]] (!%p964_p11)  ;;  %s978_s26 = sld [smem:[#allocation12 + $0x102]] (!%p964_p11)  ;;  %v966_v32 = vld [vmem:[%s1365_s25 + $0x2] sm:$0x3] (!%p964_p11)  ;;  %v968_v38 = vld [vmem:[%s1365_s25 + $0x4] sm:$0x3] (!%p964_p11) }
 0x36c   : > { %s967_s13 = sld [smem:[#allocation12 + $0x2]] (!%p964_p11)  ;;  %s971_s12 = sld [smem:[#allocation12 + $0x80]] (!%p964_p11)  ;;  %v807_v22 = vld [vmem:[#allocation6] sm:$0x1] (!%p964_p11)  ;;  %vm819_vm7 = vcmask (!%p964_p11), 0  }
 0x36d   : > { %s972_s14 = sld [smem:[#allocation12 + $0x81]] (!%p964_p11)  ;;  %s973_s28 = sld [smem:[#allocation12 + $0x82]] (!%p964_p11) }
 0x36e   : > { %v979_v25 = vld [vmem:[#allocation5 + $0x2] ss:$0 sm:$0xff] (!%p964_p11) }
 0x36f   : > { %795 = vperm.xlu1 (!%p964_p11), %1074, %v979_v25   ;;  %764 = vperm.xlu0 (!%p964_p11), %1073, %v974_v28   ;;  %v777_v29 = vstv (!%p964_p11), %s976_s17  ;;  %v780_v30 = vstv (!%p964_p11), %s977_s27 }
 0x370   : > { %v713_v33 = vstv (!%p964_p11), %s711_s3  ;;  %v778_v35 = vmul.f32 (!%p964_p11), %v777_v29, %v712_v31  ;;  %v781_v36 = vmul.f32 (!%p964_p11), %v966_v32, %v780_v30 }
 0x371   : > { %v718_v34 = vstv %s965_s18  ;;  %v784_v37 = vstv %s978_s26  ;;  %v714_v39 = vmul.f32 %v713_v33, %v712_v31 }
 0x372   : > { %v719_v40 = vmul.f32 %v966_v32, %v718_v34  ;;  %v724_v41 = vstv %s967_s13  ;;  %v746_v42 = vstv %s971_s12  ;;  %v782_v44 = vadd.f32 %v781_v36, %v778_v35 }
 0x373   : > { %v749_v43 = vstv %s972_s14  ;;  %v785_v45 = vmul.f32 %v968_v38, %v784_v37  ;;  %v725_v47 = vmul.f32 %v968_v38, %v724_v41  ;;  %v747_v48 = vmul.f32 %v746_v42, %v712_v31 }
 0x374   : > { %v720_v46 = vadd.f32 %v719_v40, %v714_v39  ;;  %v750_v49 = vmul.f32 %v966_v32, %v749_v43  ;;  %v753_v50 = vstv %s973_s28 }
 0x375   : > { %v786_v51 = vadd.f32 %v785_v45, %v782_v44  ;;  %v754_v54 = vmul.f32 %v968_v38, %v753_v50 }
 0x376   : > { %v726_v52 = vadd.f32 %v725_v47, %v720_v46  ;;  %v751_v53 = vadd.f32 %v750_v49, %v747_v48 }
 0x378   : > { %v755_v59 = vadd.f32 %v754_v54, %v751_v53 }
 0x3ea   : > { %v735_v56 = vpop.permute.xlu0 %734 }
 0x3eb   : > { %v737_v58 = vadd.f32 %v735_v56, %v726_v52 }
 0x3ed   : > { %v970_v61 = vmul.f32 -1.442695, %v737_v58 }
 0x3ee   : > { %v796_v55 = vpop.permute.xlu1 %795  ;;  %v765_v62 = vpop.permute.xlu0 %764 }
 0x3ef   : > { %v798_v57 = vadd.f32 %v796_v55, %v786_v51  ;;  %v767_v63 = vadd.f32 %v765_v62, %v755_v59 }
 0x3f1   : > { %v980_v60 = vmul.f32 -1.442695, %v798_v57  ;;  %v975_v0 = vmul.f32 -1.442695, %v767_v63 }
 0x3f3   : > { %1075 = vpow2.f32 %v980_v60 }
 0x3f4   : > { %1077 = vpow2.f32 %v970_v61 }
 0x3f5   : > { %1079 = vpow2.f32 %v975_v0 }
 0x3fd   : > { %v1076_v1 = vpop.eup %1075 }
 0x3fe   : > { %v1078_v2 = vpop.eup %1077  ;;  %v802_v3 = vadd.f32 1.0, %v1076_v1 }
 0x3ff   : > { %v741_v4 = vadd.f32 1.0, %v1078_v2  ;;  %v1080_v5 = vpop.eup %1079 }
 0x400   : > { %v771_v6 = vadd.f32 1.0, %v1080_v5 }
 0x401   : > { %1081 = vrcp.f32 %v741_v4 }
 0x402   : > { %1083 = vrcp.f32 %v802_v3 }
 0x403   : > { %1085 = vrcp.f32 %v771_v6 }
 0x40b   : > { %v1082_v7 = vpop.eup %1081 }
 0x40c   : > { %v1084_v8 = vpop.eup %1083  ;;  %v744_v10 = vmul.f32 %v1082_v7, %v737_v58 }
 0x40d   : > { %v1086_v9 = vpop.eup %1085  ;;  %v805_v12 = vmul.f32 %v1084_v8, %v798_v57 }
 0x40e   : > { %v774_v11 = vmul.f32 %v1086_v9, %v767_v63 }
 0x410   : > { %v775_v13 = vadd.f32 %v774_v11, %v744_v10 }
 0x412   : > { %v806_v14 = vadd.f32 %v805_v12, %v775_v13 }
 0x414   : > { %v809_v15 = vsel %vm808_vm6, %v806_v14, 0.0 }
 0x415   : > { %v810_v16 = vrot.slane %v809_v15, 4 }
 0x417   : > { %v811_v17 = vadd.f32 %v810_v16, %v809_v15 }
 0x419   : > { %v812_v18 = vrot.slane %v811_v17, 2 }
 0x41b   : > { %v813_v19 = vadd.f32 %v812_v18, %v811_v17 }
 0x41d   : > { %v814_v20 = vrot.slane %v813_v19, 1 }
 0x41f   : > { %v815_v21 = vadd.f32 %v814_v20, %v813_v19 }
 0x421   : > { %816 = vadd.xlane.f32.xlu1 %v815_v21 }
 0x4ae   : > { %v817_v23 = vpop.xlane.xlu1 %816 }
 0x4af   : > { %v818_v24 = vadd.f32 %v817_v23, %v807_v22 }
 0x4b1   : > { %820 = vst.msk [vmem:[#allocation6] sm:$0x1] %vm819_vm7, %v818_v24 }
 0x4b2 PF: > { %824 = sbr.rel (!%p707_p8) target bundleno = 1212 (0x4bc), region = 96  ;;  %vm827_vm8 = vcmask (%p707_p8), 0  }
 0x4b8   : > { %v825_v25 = vld [vmem:[#allocation6] sm:$0x1] (%p707_p8) }
 0x4b9   : > { %v826_v26 = vmul.f32 0.0013020834, %v825_v25 }
 0x4bb   : > { %828 = vst.msk [vmem:[%s472_s24] sm:$0x1] %vm827_vm8, %v826_v26 }
 0x4bc PF: > { %s24_s23 = sadd.s32 1, %s1178_s23   ;;  %s1468_s19 = smov %s1170_s21 }
 0x4bd   : > { %p21_p12 = scmp.ge.s32.totalorder %s24_s23, 6   ;;  %s1469_s20 = smov %s1174_s22 }
 0x4be   : > { %s1470_s21 = smov %s1473_s30  ;;  %s1471_s22 = smov %s1477_s15 }
 0x4bf   :  { %23 = sbr.rel (!%p21_p12) target bundleno = 6 (0x6), region = 142 }
 0x4c6   :  { %846 = vsyncpa [#allocation9], 1 }
 0x4c7   :  { %848 = vsyncpa [#allocation9 + $0x1], 1 }
 0x4c8   :  { %849 = vsyncpa [#allocation11], 1 }

</bundles_post_ra>
